<compile_context>
chip_gen: v6e
topology: v6e:2x2x1
jax: 0.10.0
libtpu: 0.0.40
codegen_flags: <defaults>
</compile_context>

<pallas_src>
import functools

import jax
import jax.numpy as jnp
from jax import lax
from jax.experimental import pallas as pl
from jax.experimental.pallas import tpu as pltpu

_OUT_LANES = 128   # lane-dense padded width of the final Linear (true output dim = 10)
_NUM_CLASSES = 10


def _lstm_disc_kernel(x_ref, w_ih_ref, w_hh_ref, b_ref, w_lin_ref, b_lin_ref,
                      out_ref, xproj_ref, h_seq_ref, *, hidden_dim):
    """Full LSTM-over-time + Linear + Sigmoid; all operands resident in VMEM.

    Gate column order inside the kernel is [i, f, o, g] (see pack_params):
    sigmoid on the first 3H lanes, tanh on the last H lanes.
    """
    T = x_ref.shape[0]
    H = hidden_dim

    # --- Hoisted input projection: one batched MXU matmul for all T steps. ---
    xproj_ref[...] = (
        jnp.dot(x_ref[...], w_ih_ref[...], preferred_element_type=jnp.float32)
        + b_ref[...])                                            # (T, 4H)

    w_hh = w_hh_ref[...]                                         # (H, 4H)

    def step(t, carry):
        h, c = carry                                             # each (1, H) f32
        gates = (xproj_ref[pl.ds(t, 1), :]
                 + jnp.dot(h, w_hh, preferred_element_type=jnp.float32))  # (1, 4H)
        # One sigmoid over the [i, f, o] block, one tanh over the g block only.
        sig = jax.nn.sigmoid(gates[:, 0:3 * H])                  # (1, 3H)
        g_g = jnp.tanh(gates[:, 3 * H:4 * H])                    # (1, H)
        i_g = sig[:, 0 * H:1 * H]
        f_g = sig[:, 1 * H:2 * H]
        o_g = sig[:, 2 * H:3 * H]
        c_new = f_g * c + i_g * g_g
        h_new = o_g * jnp.tanh(c_new)
        h_seq_ref[pl.ds(t, 1), :] = h_new                        # buffer h_t
        return (h_new, c_new)

    h0 = jnp.zeros((1, H), jnp.float32)
    c0 = jnp.zeros((1, H), jnp.float32)
    # Guarded unroll: full unroll only for small fixed T, partial otherwise.
    unroll = T if T <= 32 else 8
    lax.fori_loop(0, T, step, (h0, c0), unroll=unroll)

    # --- Batched Linear(H -> 10, zero-padded to 128 lanes) + Sigmoid.
    # One dense, lane-aligned (T, 128) store; true logits live in lanes [0, 10).
    y = jax.nn.sigmoid(
        jnp.dot(h_seq_ref[...], w_lin_ref[...], preferred_element_type=jnp.float32)
        + b_lin_ref[...])
    out_ref[...] = y.astype(out_ref.dtype)


def lstm_discriminator_forward(x, kparams):
    """x: [T, in_dim] float32 -> output [1, T, 10] float32 (sigmoid probs)."""
    T, _ = x.shape
    H = kparams["w_hh_t"].shape[0]

    vmem = pl.BlockSpec(memory_space=pltpu.MemorySpace.VMEM)
    out_padded = pl.pallas_call(
        functools.partial(_lstm_disc_kernel, hidden_dim=H),
        out_shape=jax.ShapeDtypeStruct((T, _OUT_LANES), jnp.float32),
        in_specs=[vmem] * 6,
        out_specs=vmem,
        scratch_shapes=[
            pltpu.VMEM((T, 4 * H), jnp.float32),   # hoisted x @ W_ih + b
            pltpu.VMEM((T, H), jnp.float32),       # per-step hidden states
        ],
    )(x, kparams["w_ih_t"], kparams["w_hh_t"], kparams["b"],
      kparams["w_lin_t"], kparams["b_lin"])

    # Drop the lane padding outside Pallas, then view(batch=1, seq_len, 10).
    return out_padded[:, :_NUM_CLASSES].reshape(1, T, _NUM_CLASSES)


# --------------------------------------------------------------------------- #
# Parameter handling: raw params use PyTorch layout / gate order [i, f, g, o];
# pack_params converts them to the kernel layout (transposed, gate order
# [i, f, o, g], fused bias, lane-padded Linear).
# --------------------------------------------------------------------------- #
def init_pytorch_params(key, in_dim, hidden_dim):
    """Deterministic init mimicking PyTorch's U(-1/sqrt(H), 1/sqrt(H)); PyTorch layout."""
    k = 1.0 / jnp.sqrt(jnp.float32(hidden_dim))
    ks = jax.random.split(key, 6)
    u = lambda kk, shape: jax.random.uniform(kk, shape, jnp.float32, -k, k)
    return {
        "w_ih": u(ks[0], (4 * hidden_dim, in_dim)),      # weight_ih_l0, rows [i,f,g,o]
        "w_hh": u(ks[1], (4 * hidden_dim, hidden_dim)),  # weight_hh_l0, rows [i,f,g,o]
        "b_ih": u(ks[2], (4 * hidden_dim,)),
        "b_hh": u(ks[3], (4 * hidden_dim,)),
        "w_lin": u(ks[4], (10, hidden_dim)),             # nn.Linear(hidden, 10)
        "b_lin": u(ks[5], (10,)),
    }


def pack_params(raw, hidden_dim):
    """Convert PyTorch-layout params into the kernel's right-multiply layout."""
    H = hidden_dim

    def reorder_rows(w):  # PyTorch gate order [i, f, g, o] -> kernel order [i, f, o, g]
        i, f, g, o = (w[0 * H:1 * H], w[1 * H:2 * H], w[2 * H:3 * H], w[3 * H:4 * H])
        return jnp.concatenate([i, f, o, g], axis=0)

    w_ih_t = reorder_rows(raw["w_ih"]).T                    # (in_dim, 4H)
    w_hh_t = reorder_rows(raw["w_hh"]).T                    # (H, 4H)
    b = reorder_rows(raw["b_ih"] + raw["b_hh"]).reshape(1, -1)   # (1, 4H)

    w_lin_t = jnp.zeros((H, _OUT_LANES), jnp.float32).at[:, :_NUM_CLASSES].set(
        raw["w_lin"].T)                                      # (H, 128), lanes >=10 are 0
    b_lin = jnp.zeros((1, _OUT_LANES), jnp.float32).at[0, :_NUM_CLASSES].set(
        raw["b_lin"])                                        # (1, 128)

    return {"w_ih_t": w_ih_t, "w_hh_t": w_hh_t, "b": b,
            "w_lin_t": w_lin_t, "b_lin": b_lin}


def _reference_forward(x, raw, hidden_dim):
    """Pure-JAX reference using PyTorch layout / gate order (correctness oracle)."""
    H = hidden_dim
    w_ih_t = raw["w_ih"].T
    w_hh_t = raw["w_hh"].T
    b = (raw["b_ih"] + raw["b_hh"])[None, :]
    w_lin_t = raw["w_lin"].T
    b_lin = raw["b_lin"][None, :]

    def step(carry, x_t):
        h, c = carry
        gates = x_t[None, :] @ w_ih_t + h @ w_hh_t + b       # (1, 4H), order [i,f,g,o]
        i_g = jax.nn.sigmoid(gates[:, 0 * H:1 * H])
        f_g = jax.nn.sigmoid(gates[:, 1 * H:2 * H])
        g_g = jnp.tanh(gates[:, 2 * H:3 * H])
        o_g = jax.nn.sigmoid(gates[:, 3 * H:4 * H])
        c = f_g * c + i_g * g_g
        h = o_g * jnp.tanh(c)
        y = jax.nn.sigmoid(h @ w_lin_t + b_lin)
        return (h, c), y[0]

    h0 = jnp.zeros((1, H), jnp.float32)
    c0 = jnp.zeros((1, H), jnp.float32)
    _, ys = lax.scan(step, (h0, c0), x)
    return ys.reshape(1, x.shape[0], _NUM_CLASSES)


if __name__ == "__main__":
    in_dim = 8
    hidden_dim = 32
    seq_len = 16

    key = jax.random.PRNGKey(0)
    k_param, k_x = jax.random.split(key)
    raw_params = init_pytorch_params(k_param, in_dim, hidden_dim)
    kparams = pack_params(raw_params, hidden_dim)
    x = jax.random.normal(k_x, (seq_len, in_dim), jnp.float32)  # [T, in_dim]

    out = lstm_discriminator_forward(x, kparams)
    out = jax.block_until_ready(out)

    ref = jax.block_until_ready(_reference_forward(x, raw_params, hidden_dim))
    assert out.shape == (1, seq_len, _NUM_CLASSES), out.shape
    assert jnp.allclose(out, ref, atol=5e-5, rtol=1e-4), float(jnp.abs(out - ref).max())

    print("KERNEL_OK")
</pallas_src>

<mosaic_0001>
module attributes {stable_mosaic.version = 11 : i64} {
  func.func @_lstm_disc_kernel(%arg0: memref<16x8xf32, #tpu.memory_space<vmem>>, %arg1: memref<8x128xf32, #tpu.memory_space<vmem>>, %arg2: memref<32x128xf32, #tpu.memory_space<vmem>>, %arg3: memref<1x128xf32, #tpu.memory_space<vmem>>, %arg4: memref<32x128xf32, #tpu.memory_space<vmem>>, %arg5: memref<1x128xf32, #tpu.memory_space<vmem>>, %arg6: memref<16x128xf32, #tpu.memory_space<vmem>>, %arg7: memref<16x128xf32, #tpu.memory_space<vmem>>, %arg8: memref<16x32xf32, #tpu.memory_space<vmem>>) attributes {dimension_semantics = [], scalar_prefetch = 0 : i64, scratch_operands = 2 : i64, tpu.core_type = #tpu.core_type<tc>} {
    %c0 = arith.constant 0 : index
    %c0_0 = arith.constant 0 : index
    %0 = vector.load %arg0[%c0, %c0_0] : memref<16x8xf32, #tpu.memory_space<vmem>>, vector<16x8xf32>
    %c0_1 = arith.constant 0 : index
    %c0_2 = arith.constant 0 : index
    %1 = vector.load %arg1[%c0_1, %c0_2] : memref<8x128xf32, #tpu.memory_space<vmem>>, vector<8x128xf32>
    %cst = arith.constant dense<0.000000e+00> : vector<16x128xf32>
    %2 = tpu.matmul %0, %1, %cst {dimension_numbers = #tpu.dot_dimension_numbers<[1], [0], [0], [1], [0, 0, 1, 1], [], []>} : vector<16x8xf32>, vector<8x128xf32>, vector<16x128xf32> -> vector<16x128xf32>
    %c0_3 = arith.constant 0 : index
    %c0_4 = arith.constant 0 : index
    %3 = vector.load %arg3[%c0_3, %c0_4] : memref<1x128xf32, #tpu.memory_space<vmem>>, vector<1x128xf32>
    %4 = vector.broadcast %3 : vector<1x128xf32> to vector<16x128xf32>
    %5 = arith.addf %2, %4 : vector<16x128xf32>
    %c0_5 = arith.constant 0 : index
    %c0_6 = arith.constant 0 : index
    %6 = vector.load %arg7[%c0_5, %c0_6] : memref<16x128xf32, #tpu.memory_space<vmem>>, vector<16x128xf32>
    tpu.vector_store %arg7[%c0_5, %c0_6], %5 {strides = array<i32>} : memref<16x128xf32, #tpu.memory_space<vmem>>, vector<16x128xf32>,
    %c0_7 = arith.constant 0 : index
    %c0_8 = arith.constant 0 : index
    %7 = vector.load %arg2[%c0_7, %c0_8] : memref<32x128xf32, #tpu.memory_space<vmem>>, vector<32x128xf32>
    %cst_9 = arith.constant 0.000000e+00 : f32
    %8 = vector.broadcast %cst_9 : f32 to vector<1x32xf32>
    %cst_10 = arith.constant 0.000000e+00 : f32
    %9 = vector.broadcast %cst_10 : f32 to vector<1x32xf32>
    %c0_i32 = arith.constant 0 : i32
    %10 = arith.index_cast %c0_i32 : i32 to index
    %c0_11 = arith.constant 0 : index
    %11 = vector.load %arg7[%10, %c0_11] : memref<16x128xf32, #tpu.memory_space<vmem>>, vector<1x128xf32>
    %cst_12 = arith.constant dense<0.000000e+00> : vector<1x128xf32>
    %12 = tpu.matmul %8, %7, %cst_12 {dimension_numbers = #tpu.dot_dimension_numbers<[1], [0], [0], [1], [0, 0, 1, 1], [], []>} : vector<1x32xf32>, vector<32x128xf32>, vector<1x128xf32> -> vector<1x128xf32>
    %13 = arith.addf %11, %12 : vector<1x128xf32>
    %14 = vector.extract_strided_slice %13 {offsets = [0, 0], sizes = [1, 96], strides = [1, 1]} : vector<1x128xf32> to vector<1x96xf32>
    %15 = arith.negf %14 : vector<1x96xf32>
    %16 = math.exp %15 : vector<1x96xf32>
    %cst_13 = arith.constant 1.000000e+00 : f32
    %17 = vector.broadcast %cst_13 : f32 to vector<1x96xf32>
    %18 = arith.addf %17, %16 : vector<1x96xf32>
    %19 = arith.divf %17, %18 : vector<1x96xf32>
    %20 = vector.extract_strided_slice %13 {offsets = [0, 96], sizes = [1, 32], strides = [1, 1]} : vector<1x128xf32> to vector<1x32xf32>
    %21 = math.tanh %20 : vector<1x32xf32>
    %22 = vector.extract_strided_slice %19 {offsets = [0, 0], sizes = [1, 32], strides = [1, 1]} : vector<1x96xf32> to vector<1x32xf32>
    %23 = vector.extract_strided_slice %19 {offsets = [0, 32], sizes = [1, 32], strides = [1, 1]} : vector<1x96xf32> to vector<1x32xf32>
    %24 = vector.extract_strided_slice %19 {offsets = [0, 64], sizes = [1, 32], strides = [1, 1]} : vector<1x96xf32> to vector<1x32xf32>
    %25 = arith.mulf %23, %9 : vector<1x32xf32>
    %26 = arith.mulf %22, %21 : vector<1x32xf32>
    %27 = arith.addf %25, %26 : vector<1x32xf32>
    %28 = math.tanh %27 : vector<1x32xf32>
    %29 = arith.mulf %24, %28 : vector<1x32xf32>
    %30 = arith.index_cast %c0_i32 : i32 to index
    %c0_14 = arith.constant 0 : index
    %31 = vector.load %arg8[%30, %c0_14] : memref<16x32xf32, #tpu.memory_space<vmem>>, vector<1x32xf32>
    tpu.vector_store %arg8[%30, %c0_14], %29 {strides = array<i32>} : memref<16x32xf32, #tpu.memory_space<vmem>>, vector<1x32xf32>,
    %c1_i32 = arith.constant 1 : i32
    %32 = arith.index_cast %c1_i32 : i32 to index
    %c0_15 = arith.constant 0 : index
    %33 = vector.load %arg7[%32, %c0_15] : memref<16x128xf32, #tpu.memory_space<vmem>>, vector<1x128xf32>
    %cst_16 = arith.constant dense<0.000000e+00> : vector<1x128xf32>
    %34 = tpu.matmul %29, %7, %cst_16 {dimension_numbers = #tpu.dot_dimension_numbers<[1], [0], [0], [1], [0, 0, 1, 1], [], []>} : vector<1x32xf32>, vector<32x128xf32>, vector<1x128xf32> -> vector<1x128xf32>
    %35 = arith.addf %33, %34 : vector<1x128xf32>
    %36 = vector.extract_strided_slice %35 {offsets = [0, 0], sizes = [1, 96], strides = [1, 1]} : vector<1x128xf32> to vector<1x96xf32>
    %37 = arith.negf %36 : vector<1x96xf32>
    %38 = math.exp %37 : vector<1x96xf32>
    %cst_17 = arith.constant 1.000000e+00 : f32
    %39 = vector.broadcast %cst_17 : f32 to vector<1x96xf32>
    %40 = arith.addf %39, %38 : vector<1x96xf32>
    %41 = arith.divf %39, %40 : vector<1x96xf32>
    %42 = vector.extract_strided_slice %35 {offsets = [0, 96], sizes = [1, 32], strides = [1, 1]} : vector<1x128xf32> to vector<1x32xf32>
    %43 = math.tanh %42 : vector<1x32xf32>
    %44 = vector.extract_strided_slice %41 {offsets = [0, 0], sizes = [1, 32], strides = [1, 1]} : vector<1x96xf32> to vector<1x32xf32>
    %45 = vector.extract_strided_slice %41 {offsets = [0, 32], sizes = [1, 32], strides = [1, 1]} : vector<1x96xf32> to vector<1x32xf32>
    %46 = vector.extract_strided_slice %41 {offsets = [0, 64], sizes = [1, 32], strides = [1, 1]} : vector<1x96xf32> to vector<1x32xf32>
    %47 = arith.mulf %45, %27 : vector<1x32xf32>
    %48 = arith.mulf %44, %43 : vector<1x32xf32>
    %49 = arith.addf %47, %48 : vector<1x32xf32>
    %50 = math.tanh %49 : vector<1x32xf32>
    %51 = arith.mulf %46, %50 : vector<1x32xf32>
    %52 = arith.index_cast %c1_i32 : i32 to index
    %c0_18 = arith.constant 0 : index
    %53 = vector.load %arg8[%52, %c0_18] : memref<16x32xf32, #tpu.memory_space<vmem>>, vector<1x32xf32>
    tpu.vector_store %arg8[%52, %c0_18], %51 {strides = array<i32>} : memref<16x32xf32, #tpu.memory_space<vmem>>, vector<1x32xf32>,
    %c2_i32 = arith.constant 2 : i32
    %54 = arith.index_cast %c2_i32 : i32 to index
    %c0_19 = arith.constant 0 : index
    %55 = vector.load %arg7[%54, %c0_19] : memref<16x128xf32, #tpu.memory_space<vmem>>, vector<1x128xf32>
    %cst_20 = arith.constant dense<0.000000e+00> : vector<1x128xf32>
    %56 = tpu.matmul %51, %7, %cst_20 {dimension_numbers = #tpu.dot_dimension_numbers<[1], [0], [0], [1], [0, 0, 1, 1], [], []>} : vector<1x32xf32>, vector<32x128xf32>, vector<1x128xf32> -> vector<1x128xf32>
    %57 = arith.addf %55, %56 : vector<1x128xf32>
    %58 = vector.extract_strided_slice %57 {offsets = [0, 0], sizes = [1, 96], strides = [1, 1]} : vector<1x128xf32> to vector<1x96xf32>
    %59 = arith.negf %58 : vector<1x96xf32>
    %60 = math.exp %59 : vector<1x96xf32>
    %cst_21 = arith.constant 1.000000e+00 : f32
    %61 = vector.broadcast %cst_21 : f32 to vector<1x96xf32>
    %62 = arith.addf %61, %60 : vector<1x96xf32>
    %63 = arith.divf %61, %62 : vector<1x96xf32>
    %64 = vector.extract_strided_slice %57 {offsets = [0, 96], sizes = [1, 32], strides = [1, 1]} : vector<1x128xf32> to vector<1x32xf32>
    %65 = math.tanh %64 : vector<1x32xf32>
    %66 = vector.extract_strided_slice %63 {offsets = [0, 0], sizes = [1, 32], strides = [1, 1]} : vector<1x96xf32> to vector<1x32xf32>
    %67 = vector.extract_strided_slice %63 {offsets = [0, 32], sizes = [1, 32], strides = [1, 1]} : vector<1x96xf32> to vector<1x32xf32>
    %68 = vector.extract_strided_slice %63 {offsets = [0, 64], sizes = [1, 32], strides = [1, 1]} : vector<1x96xf32> to vector<1x32xf32>
    %69 = arith.mulf %67, %49 : vector<1x32xf32>
    %70 = arith.mulf %66, %65 : vector<1x32xf32>
    %71 = arith.addf %69, %70 : vector<1x32xf32>
    %72 = math.tanh %71 : vector<1x32xf32>
    %73 = arith.mulf %68, %72 : vector<1x32xf32>
    %74 = arith.index_cast %c2_i32 : i32 to index
    %c0_22 = arith.constant 0 : index
    %75 = vector.load %arg8[%74, %c0_22] : memref<16x32xf32, #tpu.memory_space<vmem>>, vector<1x32xf32>
    tpu.vector_store %arg8[%74, %c0_22], %73 {strides = array<i32>} : memref<16x32xf32, #tpu.memory_space<vmem>>, vector<1x32xf32>,
    %c3_i32 = arith.constant 3 : i32
    %76 = arith.index_cast %c3_i32 : i32 to index
    %c0_23 = arith.constant 0 : index
    %77 = vector.load %arg7[%76, %c0_23] : memref<16x128xf32, #tpu.memory_space<vmem>>, vector<1x128xf32>
    %cst_24 = arith.constant dense<0.000000e+00> : vector<1x128xf32>
    %78 = tpu.matmul %73, %7, %cst_24 {dimension_numbers = #tpu.dot_dimension_numbers<[1], [0], [0], [1], [0, 0, 1, 1], [], []>} : vector<1x32xf32>, vector<32x128xf32>, vector<1x128xf32> -> vector<1x128xf32>
    %79 = arith.addf %77, %78 : vector<1x128xf32>
    %80 = vector.extract_strided_slice %79 {offsets = [0, 0], sizes = [1, 96], strides = [1, 1]} : vector<1x128xf32> to vector<1x96xf32>
    %81 = arith.negf %80 : vector<1x96xf32>
    %82 = math.exp %81 : vector<1x96xf32>
    %cst_25 = arith.constant 1.000000e+00 : f32
    %83 = vector.broadcast %cst_25 : f32 to vector<1x96xf32>
    %84 = arith.addf %83, %82 : vector<1x96xf32>
    %85 = arith.divf %83, %84 : vector<1x96xf32>
    %86 = vector.extract_strided_slice %79 {offsets = [0, 96], sizes = [1, 32], strides = [1, 1]} : vector<1x128xf32> to vector<1x32xf32>
    %87 = math.tanh %86 : vector<1x32xf32>
    %88 = vector.extract_strided_slice %85 {offsets = [0, 0], sizes = [1, 32], strides = [1, 1]} : vector<1x96xf32> to vector<1x32xf32>
    %89 = vector.extract_strided_slice %85 {offsets = [0, 32], sizes = [1, 32], strides = [1, 1]} : vector<1x96xf32> to vector<1x32xf32>
    %90 = vector.extract_strided_slice %85 {offsets = [0, 64], sizes = [1, 32], strides = [1, 1]} : vector<1x96xf32> to vector<1x32xf32>
    %91 = arith.mulf %89, %71 : vector<1x32xf32>
    %92 = arith.mulf %88, %87 : vector<1x32xf32>
    %93 = arith.addf %91, %92 : vector<1x32xf32>
    %94 = math.tanh %93 : vector<1x32xf32>
    %95 = arith.mulf %90, %94 : vector<1x32xf32>
    %96 = arith.index_cast %c3_i32 : i32 to index
    %c0_26 = arith.constant 0 : index
    %97 = vector.load %arg8[%96, %c0_26] : memref<16x32xf32, #tpu.memory_space<vmem>>, vector<1x32xf32>
    tpu.vector_store %arg8[%96, %c0_26], %95 {strides = array<i32>} : memref<16x32xf32, #tpu.memory_space<vmem>>, vector<1x32xf32>,
    %c4_i32 = arith.constant 4 : i32
    %98 = arith.index_cast %c4_i32 : i32 to index
    %c0_27 = arith.constant 0 : index
    %99 = vector.load %arg7[%98, %c0_27] : memref<16x128xf32, #tpu.memory_space<vmem>>, vector<1x128xf32>
    %cst_28 = arith.constant dense<0.000000e+00> : vector<1x128xf32>
    %100 = tpu.matmul %95, %7, %cst_28 {dimension_numbers = #tpu.dot_dimension_numbers<[1], [0], [0], [1], [0, 0, 1, 1], [], []>} : vector<1x32xf32>, vector<32x128xf32>, vector<1x128xf32> -> vector<1x128xf32>
    %101 = arith.addf %99, %100 : vector<1x128xf32>
    %102 = vector.extract_strided_slice %101 {offsets = [0, 0], sizes = [1, 96], strides = [1, 1]} : vector<1x128xf32> to vector<1x96xf32>
    %103 = arith.negf %102 : vector<1x96xf32>
    %104 = math.exp %103 : vector<1x96xf32>
    %cst_29 = arith.constant 1.000000e+00 : f32
    %105 = vector.broadcast %cst_29 : f32 to vector<1x96xf32>
    %106 = arith.addf %105, %104 : vector<1x96xf32>
    %107 = arith.divf %105, %106 : vector<1x96xf32>
    %108 = vector.extract_strided_slice %101 {offsets = [0, 96], sizes = [1, 32], strides = [1, 1]} : vector<1x128xf32> to vector<1x32xf32>
    %109 = math.tanh %108 : vector<1x32xf32>
    %110 = vector.extract_strided_slice %107 {offsets = [0, 0], sizes = [1, 32], strides = [1, 1]} : vector<1x96xf32> to vector<1x32xf32>
    %111 = vector.extract_strided_slice %107 {offsets = [0, 32], sizes = [1, 32], strides = [1, 1]} : vector<1x96xf32> to vector<1x32xf32>
    %112 = vector.extract_strided_slice %107 {offsets = [0, 64], sizes = [1, 32], strides = [1, 1]} : vector<1x96xf32> to vector<1x32xf32>
    %113 = arith.mulf %111, %93 : vector<1x32xf32>
    %114 = arith.mulf %110, %109 : vector<1x32xf32>
    %115 = arith.addf %113, %114 : vector<1x32xf32>
    %116 = math.tanh %115 : vector<1x32xf32>
    %117 = arith.mulf %112, %116 : vector<1x32xf32>
    %118 = arith.index_cast %c4_i32 : i32 to index
    %c0_30 = arith.constant 0 : index
    %119 = vector.load %arg8[%118, %c0_30] : memref<16x32xf32, #tpu.memory_space<vmem>>, vector<1x32xf32>
    tpu.vector_store %arg8[%118, %c0_30], %117 {strides = array<i32>} : memref<16x32xf32, #tpu.memory_space<vmem>>, vector<1x32xf32>,
    %c5_i32 = arith.constant 5 : i32
    %120 = arith.index_cast %c5_i32 : i32 to index
    %c0_31 = arith.constant 0 : index
    %121 = vector.load %arg7[%120, %c0_31] : memref<16x128xf32, #tpu.memory_space<vmem>>, vector<1x128xf32>
    %cst_32 = arith.constant dense<0.000000e+00> : vector<1x128xf32>
    %122 = tpu.matmul %117, %7, %cst_32 {dimension_numbers = #tpu.dot_dimension_numbers<[1], [0], [0], [1], [0, 0, 1, 1], [], []>} : vector<1x32xf32>, vector<32x128xf32>, vector<1x128xf32> -> vector<1x128xf32>
    %123 = arith.addf %121, %122 : vector<1x128xf32>
    %124 = vector.extract_strided_slice %123 {offsets = [0, 0], sizes = [1, 96], strides = [1, 1]} : vector<1x128xf32> to vector<1x96xf32>
    %125 = arith.negf %124 : vector<1x96xf32>
    %126 = math.exp %125 : vector<1x96xf32>
    %cst_33 = arith.constant 1.000000e+00 : f32
    %127 = vector.broadcast %cst_33 : f32 to vector<1x96xf32>
    %128 = arith.addf %127, %126 : vector<1x96xf32>
    %129 = arith.divf %127, %128 : vector<1x96xf32>
    %130 = vector.extract_strided_slice %123 {offsets = [0, 96], sizes = [1, 32], strides = [1, 1]} : vector<1x128xf32> to vector<1x32xf32>
    %131 = math.tanh %130 : vector<1x32xf32>
    %132 = vector.extract_strided_slice %129 {offsets = [0, 0], sizes = [1, 32], strides = [1, 1]} : vector<1x96xf32> to vector<1x32xf32>
    %133 = vector.extract_strided_slice %129 {offsets = [0, 32], sizes = [1, 32], strides = [1, 1]} : vector<1x96xf32> to vector<1x32xf32>
    %134 = vector.extract_strided_slice %129 {offsets = [0, 64], sizes = [1, 32], strides = [1, 1]} : vector<1x96xf32> to vector<1x32xf32>
    %135 = arith.mulf %133, %115 : vector<1x32xf32>
    %136 = arith.mulf %132, %131 : vector<1x32xf32>
    %137 = arith.addf %135, %136 : vector<1x32xf32>
    %138 = math.tanh %137 : vector<1x32xf32>
    %139 = arith.mulf %134, %138 : vector<1x32xf32>
    %140 = arith.index_cast %c5_i32 : i32 to index
    %c0_34 = arith.constant 0 : index
    %141 = vector.load %arg8[%140, %c0_34] : memref<16x32xf32, #tpu.memory_space<vmem>>, vector<1x32xf32>
    tpu.vector_store %arg8[%140, %c0_34], %139 {strides = array<i32>} : memref<16x32xf32, #tpu.memory_space<vmem>>, vector<1x32xf32>,
    %c6_i32 = arith.constant 6 : i32
    %142 = arith.index_cast %c6_i32 : i32 to index
    %c0_35 = arith.constant 0 : index
    %143 = vector.load %arg7[%142, %c0_35] : memref<16x128xf32, #tpu.memory_space<vmem>>, vector<1x128xf32>
    %cst_36 = arith.constant dense<0.000000e+00> : vector<1x128xf32>
    %144 = tpu.matmul %139, %7, %cst_36 {dimension_numbers = #tpu.dot_dimension_numbers<[1], [0], [0], [1], [0, 0, 1, 1], [], []>} : vector<1x32xf32>, vector<32x128xf32>, vector<1x128xf32> -> vector<1x128xf32>
    %145 = arith.addf %143, %144 : vector<1x128xf32>
    %146 = vector.extract_strided_slice %145 {offsets = [0, 0], sizes = [1, 96], strides = [1, 1]} : vector<1x128xf32> to vector<1x96xf32>
    %147 = arith.negf %146 : vector<1x96xf32>
    %148 = math.exp %147 : vector<1x96xf32>
    %cst_37 = arith.constant 1.000000e+00 : f32
    %149 = vector.broadcast %cst_37 : f32 to vector<1x96xf32>
    %150 = arith.addf %149, %148 : vector<1x96xf32>
    %151 = arith.divf %149, %150 : vector<1x96xf32>
    %152 = vector.extract_strided_slice %145 {offsets = [0, 96], sizes = [1, 32], strides = [1, 1]} : vector<1x128xf32> to vector<1x32xf32>
    %153 = math.tanh %152 : vector<1x32xf32>
    %154 = vector.extract_strided_slice %151 {offsets = [0, 0], sizes = [1, 32], strides = [1, 1]} : vector<1x96xf32> to vector<1x32xf32>
    %155 = vector.extract_strided_slice %151 {offsets = [0, 32], sizes = [1, 32], strides = [1, 1]} : vector<1x96xf32> to vector<1x32xf32>
    %156 = vector.extract_strided_slice %151 {offsets = [0, 64], sizes = [1, 32], strides = [1, 1]} : vector<1x96xf32> to vector<1x32xf32>
    %157 = arith.mulf %155, %137 : vector<1x32xf32>
    %158 = arith.mulf %154, %153 : vector<1x32xf32>
    %159 = arith.addf %157, %158 : vector<1x32xf32>
    %160 = math.tanh %159 : vector<1x32xf32>
    %161 = arith.mulf %156, %160 : vector<1x32xf32>
    %162 = arith.index_cast %c6_i32 : i32 to index
    %c0_38 = arith.constant 0 : index
    %163 = vector.load %arg8[%162, %c0_38] : memref<16x32xf32, #tpu.memory_space<vmem>>, vector<1x32xf32>
    tpu.vector_store %arg8[%162, %c0_38], %161 {strides = array<i32>} : memref<16x32xf32, #tpu.memory_space<vmem>>, vector<1x32xf32>,
    %c7_i32 = arith.constant 7 : i32
    %164 = arith.index_cast %c7_i32 : i32 to index
    %c0_39 = arith.constant 0 : index
    %165 = vector.load %arg7[%164, %c0_39] : memref<16x128xf32, #tpu.memory_space<vmem>>, vector<1x128xf32>
    %cst_40 = arith.constant dense<0.000000e+00> : vector<1x128xf32>
    %166 = tpu.matmul %161, %7, %cst_40 {dimension_numbers = #tpu.dot_dimension_numbers<[1], [0], [0], [1], [0, 0, 1, 1], [], []>} : vector<1x32xf32>, vector<32x128xf32>, vector<1x128xf32> -> vector<1x128xf32>
    %167 = arith.addf %165, %166 : vector<1x128xf32>
    %168 = vector.extract_strided_slice %167 {offsets = [0, 0], sizes = [1, 96], strides = [1, 1]} : vector<1x128xf32> to vector<1x96xf32>
    %169 = arith.negf %168 : vector<1x96xf32>
    %170 = math.exp %169 : vector<1x96xf32>
    %cst_41 = arith.constant 1.000000e+00 : f32
    %171 = vector.broadcast %cst_41 : f32 to vector<1x96xf32>
    %172 = arith.addf %171, %170 : vector<1x96xf32>
    %173 = arith.divf %171, %172 : vector<1x96xf32>
    %174 = vector.extract_strided_slice %167 {offsets = [0, 96], sizes = [1, 32], strides = [1, 1]} : vector<1x128xf32> to vector<1x32xf32>
    %175 = math.tanh %174 : vector<1x32xf32>
    %176 = vector.extract_strided_slice %173 {offsets = [0, 0], sizes = [1, 32], strides = [1, 1]} : vector<1x96xf32> to vector<1x32xf32>
    %177 = vector.extract_strided_slice %173 {offsets = [0, 32], sizes = [1, 32], strides = [1, 1]} : vector<1x96xf32> to vector<1x32xf32>
    %178 = vector.extract_strided_slice %173 {offsets = [0, 64], sizes = [1, 32], strides = [1, 1]} : vector<1x96xf32> to vector<1x32xf32>
    %179 = arith.mulf %177, %159 : vector<1x32xf32>
    %180 = arith.mulf %176, %175 : vector<1x32xf32>
    %181 = arith.addf %179, %180 : vector<1x32xf32>
    %182 = math.tanh %181 : vector<1x32xf32>
    %183 = arith.mulf %178, %182 : vector<1x32xf32>
    %184 = arith.index_cast %c7_i32 : i32 to index
    %c0_42 = arith.constant 0 : index
    %185 = vector.load %arg8[%184, %c0_42] : memref<16x32xf32, #tpu.memory_space<vmem>>, vector<1x32xf32>
    tpu.vector_store %arg8[%184, %c0_42], %183 {strides = array<i32>} : memref<16x32xf32, #tpu.memory_space<vmem>>, vector<1x32xf32>,
    %c8_i32 = arith.constant 8 : i32
    %186 = arith.index_cast %c8_i32 : i32 to index
    %c0_43 = arith.constant 0 : index
    %187 = vector.load %arg7[%186, %c0_43] : memref<16x128xf32, #tpu.memory_space<vmem>>, vector<1x128xf32>
    %cst_44 = arith.constant dense<0.000000e+00> : vector<1x128xf32>
    %188 = tpu.matmul %183, %7, %cst_44 {dimension_numbers = #tpu.dot_dimension_numbers<[1], [0], [0], [1], [0, 0, 1, 1], [], []>} : vector<1x32xf32>, vector<32x128xf32>, vector<1x128xf32> -> vector<1x128xf32>
    %189 = arith.addf %187, %188 : vector<1x128xf32>
    %190 = vector.extract_strided_slice %189 {offsets = [0, 0], sizes = [1, 96], strides = [1, 1]} : vector<1x128xf32> to vector<1x96xf32>
    %191 = arith.negf %190 : vector<1x96xf32>
    %192 = math.exp %191 : vector<1x96xf32>
    %cst_45 = arith.constant 1.000000e+00 : f32
    %193 = vector.broadcast %cst_45 : f32 to vector<1x96xf32>
    %194 = arith.addf %193, %192 : vector<1x96xf32>
    %195 = arith.divf %193, %194 : vector<1x96xf32>
    %196 = vector.extract_strided_slice %189 {offsets = [0, 96], sizes = [1, 32], strides = [1, 1]} : vector<1x128xf32> to vector<1x32xf32>
    %197 = math.tanh %196 : vector<1x32xf32>
    %198 = vector.extract_strided_slice %195 {offsets = [0, 0], sizes = [1, 32], strides = [1, 1]} : vector<1x96xf32> to vector<1x32xf32>
    %199 = vector.extract_strided_slice %195 {offsets = [0, 32], sizes = [1, 32], strides = [1, 1]} : vector<1x96xf32> to vector<1x32xf32>
    %200 = vector.extract_strided_slice %195 {offsets = [0, 64], sizes = [1, 32], strides = [1, 1]} : vector<1x96xf32> to vector<1x32xf32>
    %201 = arith.mulf %199, %181 : vector<1x32xf32>
    %202 = arith.mulf %198, %197 : vector<1x32xf32>
    %203 = arith.addf %201, %202 : vector<1x32xf32>
    %204 = math.tanh %203 : vector<1x32xf32>
    %205 = arith.mulf %200, %204 : vector<1x32xf32>
    %206 = arith.index_cast %c8_i32 : i32 to index
    %c0_46 = arith.constant 0 : index
    %207 = vector.load %arg8[%206, %c0_46] : memref<16x32xf32, #tpu.memory_space<vmem>>, vector<1x32xf32>
    tpu.vector_store %arg8[%206, %c0_46], %205 {strides = array<i32>} : memref<16x32xf32, #tpu.memory_space<vmem>>, vector<1x32xf32>,
    %c9_i32 = arith.constant 9 : i32
    %208 = arith.index_cast %c9_i32 : i32 to index
    %c0_47 = arith.constant 0 : index
    %209 = vector.load %arg7[%208, %c0_47] : memref<16x128xf32, #tpu.memory_space<vmem>>, vector<1x128xf32>
    %cst_48 = arith.constant dense<0.000000e+00> : vector<1x128xf32>
    %210 = tpu.matmul %205, %7, %cst_48 {dimension_numbers = #tpu.dot_dimension_numbers<[1], [0], [0], [1], [0, 0, 1, 1], [], []>} : vector<1x32xf32>, vector<32x128xf32>, vector<1x128xf32> -> vector<1x128xf32>
    %211 = arith.addf %209, %210 : vector<1x128xf32>
    %212 = vector.extract_strided_slice %211 {offsets = [0, 0], sizes = [1, 96], strides = [1, 1]} : vector<1x128xf32> to vector<1x96xf32>
    %213 = arith.negf %212 : vector<1x96xf32>
    %214 = math.exp %213 : vector<1x96xf32>
    %cst_49 = arith.constant 1.000000e+00 : f32
    %215 = vector.broadcast %cst_49 : f32 to vector<1x96xf32>
    %216 = arith.addf %215, %214 : vector<1x96xf32>
    %217 = arith.divf %215, %216 : vector<1x96xf32>
    %218 = vector.extract_strided_slice %211 {offsets = [0, 96], sizes = [1, 32], strides = [1, 1]} : vector<1x128xf32> to vector<1x32xf32>
    %219 = math.tanh %218 : vector<1x32xf32>
    %220 = vector.extract_strided_slice %217 {offsets = [0, 0], sizes = [1, 32], strides = [1, 1]} : vector<1x96xf32> to vector<1x32xf32>
    %221 = vector.extract_strided_slice %217 {offsets = [0, 32], sizes = [1, 32], strides = [1, 1]} : vector<1x96xf32> to vector<1x32xf32>
    %222 = vector.extract_strided_slice %217 {offsets = [0, 64], sizes = [1, 32], strides = [1, 1]} : vector<1x96xf32> to vector<1x32xf32>
    %223 = arith.mulf %221, %203 : vector<1x32xf32>
    %224 = arith.mulf %220, %219 : vector<1x32xf32>
    %225 = arith.addf %223, %224 : vector<1x32xf32>
    %226 = math.tanh %225 : vector<1x32xf32>
    %227 = arith.mulf %222, %226 : vector<1x32xf32>
    %228 = arith.index_cast %c9_i32 : i32 to index
    %c0_50 = arith.constant 0 : index
    %229 = vector.load %arg8[%228, %c0_50] : memref<16x32xf32, #tpu.memory_space<vmem>>, vector<1x32xf32>
    tpu.vector_store %arg8[%228, %c0_50], %227 {strides = array<i32>} : memref<16x32xf32, #tpu.memory_space<vmem>>, vector<1x32xf32>,
    %c10_i32 = arith.constant 10 : i32
    %230 = arith.index_cast %c10_i32 : i32 to index
    %c0_51 = arith.constant 0 : index
    %231 = vector.load %arg7[%230, %c0_51] : memref<16x128xf32, #tpu.memory_space<vmem>>, vector<1x128xf32>
    %cst_52 = arith.constant dense<0.000000e+00> : vector<1x128xf32>
    %232 = tpu.matmul %227, %7, %cst_52 {dimension_numbers = #tpu.dot_dimension_numbers<[1], [0], [0], [1], [0, 0, 1, 1], [], []>} : vector<1x32xf32>, vector<32x128xf32>, vector<1x128xf32> -> vector<1x128xf32>
    %233 = arith.addf %231, %232 : vector<1x128xf32>
    %234 = vector.extract_strided_slice %233 {offsets = [0, 0], sizes = [1, 96], strides = [1, 1]} : vector<1x128xf32> to vector<1x96xf32>
    %235 = arith.negf %234 : vector<1x96xf32>
    %236 = math.exp %235 : vector<1x96xf32>
    %cst_53 = arith.constant 1.000000e+00 : f32
    %237 = vector.broadcast %cst_53 : f32 to vector<1x96xf32>
    %238 = arith.addf %237, %236 : vector<1x96xf32>
    %239 = arith.divf %237, %238 : vector<1x96xf32>
    %240 = vector.extract_strided_slice %233 {offsets = [0, 96], sizes = [1, 32], strides = [1, 1]} : vector<1x128xf32> to vector<1x32xf32>
    %241 = math.tanh %240 : vector<1x32xf32>
    %242 = vector.extract_strided_slice %239 {offsets = [0, 0], sizes = [1, 32], strides = [1, 1]} : vector<1x96xf32> to vector<1x32xf32>
    %243 = vector.extract_strided_slice %239 {offsets = [0, 32], sizes = [1, 32], strides = [1, 1]} : vector<1x96xf32> to vector<1x32xf32>
    %244 = vector.extract_strided_slice %239 {offsets = [0, 64], sizes = [1, 32], strides = [1, 1]} : vector<1x96xf32> to vector<1x32xf32>
    %245 = arith.mulf %243, %225 : vector<1x32xf32>
    %246 = arith.mulf %242, %241 : vector<1x32xf32>
    %247 = arith.addf %245, %246 : vector<1x32xf32>
    %248 = math.tanh %247 : vector<1x32xf32>
    %249 = arith.mulf %244, %248 : vector<1x32xf32>
    %250 = arith.index_cast %c10_i32 : i32 to index
    %c0_54 = arith.constant 0 : index
    %251 = vector.load %arg8[%250, %c0_54] : memref<16x32xf32, #tpu.memory_space<vmem>>, vector<1x32xf32>
    tpu.vector_store %arg8[%250, %c0_54], %249 {strides = array<i32>} : memref<16x32xf32, #tpu.memory_space<vmem>>, vector<1x32xf32>,
    %c11_i32 = arith.constant 11 : i32
    %252 = arith.index_cast %c11_i32 : i32 to index
    %c0_55 = arith.constant 0 : index
    %253 = vector.load %arg7[%252, %c0_55] : memref<16x128xf32, #tpu.memory_space<vmem>>, vector<1x128xf32>
    %cst_56 = arith.constant dense<0.000000e+00> : vector<1x128xf32>
    %254 = tpu.matmul %249, %7, %cst_56 {dimension_numbers = #tpu.dot_dimension_numbers<[1], [0], [0], [1], [0, 0, 1, 1], [], []>} : vector<1x32xf32>, vector<32x128xf32>, vector<1x128xf32> -> vector<1x128xf32>
    %255 = arith.addf %253, %254 : vector<1x128xf32>
    %256 = vector.extract_strided_slice %255 {offsets = [0, 0], sizes = [1, 96], strides = [1, 1]} : vector<1x128xf32> to vector<1x96xf32>
    %257 = arith.negf %256 : vector<1x96xf32>
    %258 = math.exp %257 : vector<1x96xf32>
    %cst_57 = arith.constant 1.000000e+00 : f32
    %259 = vector.broadcast %cst_57 : f32 to vector<1x96xf32>
    %260 = arith.addf %259, %258 : vector<1x96xf32>
    %261 = arith.divf %259, %260 : vector<1x96xf32>
    %262 = vector.extract_strided_slice %255 {offsets = [0, 96], sizes = [1, 32], strides = [1, 1]} : vector<1x128xf32> to vector<1x32xf32>
    %263 = math.tanh %262 : vector<1x32xf32>
    %264 = vector.extract_strided_slice %261 {offsets = [0, 0], sizes = [1, 32], strides = [1, 1]} : vector<1x96xf32> to vector<1x32xf32>
    %265 = vector.extract_strided_slice %261 {offsets = [0, 32], sizes = [1, 32], strides = [1, 1]} : vector<1x96xf32> to vector<1x32xf32>
    %266 = vector.extract_strided_slice %261 {offsets = [0, 64], sizes = [1, 32], strides = [1, 1]} : vector<1x96xf32> to vector<1x32xf32>
    %267 = arith.mulf %265, %247 : vector<1x32xf32>
    %268 = arith.mulf %264, %263 : vector<1x32xf32>
    %269 = arith.addf %267, %268 : vector<1x32xf32>
    %270 = math.tanh %269 : vector<1x32xf32>
    %271 = arith.mulf %266, %270 : vector<1x32xf32>
    %272 = arith.index_cast %c11_i32 : i32 to index
    %c0_58 = arith.constant 0 : index
    %273 = vector.load %arg8[%272, %c0_58] : memref<16x32xf32, #tpu.memory_space<vmem>>, vector<1x32xf32>
    tpu.vector_store %arg8[%272, %c0_58], %271 {strides = array<i32>} : memref<16x32xf32, #tpu.memory_space<vmem>>, vector<1x32xf32>,
    %c12_i32 = arith.constant 12 : i32
    %274 = arith.index_cast %c12_i32 : i32 to index
    %c0_59 = arith.constant 0 : index
    %275 = vector.load %arg7[%274, %c0_59] : memref<16x128xf32, #tpu.memory_space<vmem>>, vector<1x128xf32>
    %cst_60 = arith.constant dense<0.000000e+00> : vector<1x128xf32>
    %276 = tpu.matmul %271, %7, %cst_60 {dimension_numbers = #tpu.dot_dimension_numbers<[1], [0], [0], [1], [0, 0, 1, 1], [], []>} : vector<1x32xf32>, vector<32x128xf32>, vector<1x128xf32> -> vector<1x128xf32>
    %277 = arith.addf %275, %276 : vector<1x128xf32>
    %278 = vector.extract_strided_slice %277 {offsets = [0, 0], sizes = [1, 96], strides = [1, 1]} : vector<1x128xf32> to vector<1x96xf32>
    %279 = arith.negf %278 : vector<1x96xf32>
    %280 = math.exp %279 : vector<1x96xf32>
    %cst_61 = arith.constant 1.000000e+00 : f32
    %281 = vector.broadcast %cst_61 : f32 to vector<1x96xf32>
    %282 = arith.addf %281, %280 : vector<1x96xf32>
    %283 = arith.divf %281, %282 : vector<1x96xf32>
    %284 = vector.extract_strided_slice %277 {offsets = [0, 96], sizes = [1, 32], strides = [1, 1]} : vector<1x128xf32> to vector<1x32xf32>
    %285 = math.tanh %284 : vector<1x32xf32>
    %286 = vector.extract_strided_slice %283 {offsets = [0, 0], sizes = [1, 32], strides = [1, 1]} : vector<1x96xf32> to vector<1x32xf32>
    %287 = vector.extract_strided_slice %283 {offsets = [0, 32], sizes = [1, 32], strides = [1, 1]} : vector<1x96xf32> to vector<1x32xf32>
    %288 = vector.extract_strided_slice %283 {offsets = [0, 64], sizes = [1, 32], strides = [1, 1]} : vector<1x96xf32> to vector<1x32xf32>
    %289 = arith.mulf %287, %269 : vector<1x32xf32>
    %290 = arith.mulf %286, %285 : vector<1x32xf32>
    %291 = arith.addf %289, %290 : vector<1x32xf32>
    %292 = math.tanh %291 : vector<1x32xf32>
    %293 = arith.mulf %288, %292 : vector<1x32xf32>
    %294 = arith.index_cast %c12_i32 : i32 to index
    %c0_62 = arith.constant 0 : index
    %295 = vector.load %arg8[%294, %c0_62] : memref<16x32xf32, #tpu.memory_space<vmem>>, vector<1x32xf32>
    tpu.vector_store %arg8[%294, %c0_62], %293 {strides = array<i32>} : memref<16x32xf32, #tpu.memory_space<vmem>>, vector<1x32xf32>,
    %c13_i32 = arith.constant 13 : i32
    %296 = arith.index_cast %c13_i32 : i32 to index
    %c0_63 = arith.constant 0 : index
    %297 = vector.load %arg7[%296, %c0_63] : memref<16x128xf32, #tpu.memory_space<vmem>>, vector<1x128xf32>
    %cst_64 = arith.constant dense<0.000000e+00> : vector<1x128xf32>
    %298 = tpu.matmul %293, %7, %cst_64 {dimension_numbers = #tpu.dot_dimension_numbers<[1], [0], [0], [1], [0, 0, 1, 1], [], []>} : vector<1x32xf32>, vector<32x128xf32>, vector<1x128xf32> -> vector<1x128xf32>
    %299 = arith.addf %297, %298 : vector<1x128xf32>
    %300 = vector.extract_strided_slice %299 {offsets = [0, 0], sizes = [1, 96], strides = [1, 1]} : vector<1x128xf32> to vector<1x96xf32>
    %301 = arith.negf %300 : vector<1x96xf32>
    %302 = math.exp %301 : vector<1x96xf32>
    %cst_65 = arith.constant 1.000000e+00 : f32
    %303 = vector.broadcast %cst_65 : f32 to vector<1x96xf32>
    %304 = arith.addf %303, %302 : vector<1x96xf32>
    %305 = arith.divf %303, %304 : vector<1x96xf32>
    %306 = vector.extract_strided_slice %299 {offsets = [0, 96], sizes = [1, 32], strides = [1, 1]} : vector<1x128xf32> to vector<1x32xf32>
    %307 = math.tanh %306 : vector<1x32xf32>
    %308 = vector.extract_strided_slice %305 {offsets = [0, 0], sizes = [1, 32], strides = [1, 1]} : vector<1x96xf32> to vector<1x32xf32>
    %309 = vector.extract_strided_slice %305 {offsets = [0, 32], sizes = [1, 32], strides = [1, 1]} : vector<1x96xf32> to vector<1x32xf32>
    %310 = vector.extract_strided_slice %305 {offsets = [0, 64], sizes = [1, 32], strides = [1, 1]} : vector<1x96xf32> to vector<1x32xf32>
    %311 = arith.mulf %309, %291 : vector<1x32xf32>
    %312 = arith.mulf %308, %307 : vector<1x32xf32>
    %313 = arith.addf %311, %312 : vector<1x32xf32>
    %314 = math.tanh %313 : vector<1x32xf32>
    %315 = arith.mulf %310, %314 : vector<1x32xf32>
    %316 = arith.index_cast %c13_i32 : i32 to index
    %c0_66 = arith.constant 0 : index
    %317 = vector.load %arg8[%316, %c0_66] : memref<16x32xf32, #tpu.memory_space<vmem>>, vector<1x32xf32>
    tpu.vector_store %arg8[%316, %c0_66], %315 {strides = array<i32>} : memref<16x32xf32, #tpu.memory_space<vmem>>, vector<1x32xf32>,
    %c14_i32 = arith.constant 14 : i32
    %318 = arith.index_cast %c14_i32 : i32 to index
    %c0_67 = arith.constant 0 : index
    %319 = vector.load %arg7[%318, %c0_67] : memref<16x128xf32, #tpu.memory_space<vmem>>, vector<1x128xf32>
    %cst_68 = arith.constant dense<0.000000e+00> : vector<1x128xf32>
    %320 = tpu.matmul %315, %7, %cst_68 {dimension_numbers = #tpu.dot_dimension_numbers<[1], [0], [0], [1], [0, 0, 1, 1], [], []>} : vector<1x32xf32>, vector<32x128xf32>, vector<1x128xf32> -> vector<1x128xf32>
    %321 = arith.addf %319, %320 : vector<1x128xf32>
    %322 = vector.extract_strided_slice %321 {offsets = [0, 0], sizes = [1, 96], strides = [1, 1]} : vector<1x128xf32> to vector<1x96xf32>
    %323 = arith.negf %322 : vector<1x96xf32>
    %324 = math.exp %323 : vector<1x96xf32>
    %cst_69 = arith.constant 1.000000e+00 : f32
    %325 = vector.broadcast %cst_69 : f32 to vector<1x96xf32>
    %326 = arith.addf %325, %324 : vector<1x96xf32>
    %327 = arith.divf %325, %326 : vector<1x96xf32>
    %328 = vector.extract_strided_slice %321 {offsets = [0, 96], sizes = [1, 32], strides = [1, 1]} : vector<1x128xf32> to vector<1x32xf32>
    %329 = math.tanh %328 : vector<1x32xf32>
    %330 = vector.extract_strided_slice %327 {offsets = [0, 0], sizes = [1, 32], strides = [1, 1]} : vector<1x96xf32> to vector<1x32xf32>
    %331 = vector.extract_strided_slice %327 {offsets = [0, 32], sizes = [1, 32], strides = [1, 1]} : vector<1x96xf32> to vector<1x32xf32>
    %332 = vector.extract_strided_slice %327 {offsets = [0, 64], sizes = [1, 32], strides = [1, 1]} : vector<1x96xf32> to vector<1x32xf32>
    %333 = arith.mulf %331, %313 : vector<1x32xf32>
    %334 = arith.mulf %330, %329 : vector<1x32xf32>
    %335 = arith.addf %333, %334 : vector<1x32xf32>
    %336 = math.tanh %335 : vector<1x32xf32>
    %337 = arith.mulf %332, %336 : vector<1x32xf32>
    %338 = arith.index_cast %c14_i32 : i32 to index
    %c0_70 = arith.constant 0 : index
    %339 = vector.load %arg8[%338, %c0_70] : memref<16x32xf32, #tpu.memory_space<vmem>>, vector<1x32xf32>
    tpu.vector_store %arg8[%338, %c0_70], %337 {strides = array<i32>} : memref<16x32xf32, #tpu.memory_space<vmem>>, vector<1x32xf32>,
    %c15_i32 = arith.constant 15 : i32
    %340 = arith.index_cast %c15_i32 : i32 to index
    %c0_71 = arith.constant 0 : index
    %341 = vector.load %arg7[%340, %c0_71] : memref<16x128xf32, #tpu.memory_space<vmem>>, vector<1x128xf32>
    %cst_72 = arith.constant dense<0.000000e+00> : vector<1x128xf32>
    %342 = tpu.matmul %337, %7, %cst_72 {dimension_numbers = #tpu.dot_dimension_numbers<[1], [0], [0], [1], [0, 0, 1, 1], [], []>} : vector<1x32xf32>, vector<32x128xf32>, vector<1x128xf32> -> vector<1x128xf32>
    %343 = arith.addf %341, %342 : vector<1x128xf32>
    %344 = vector.extract_strided_slice %343 {offsets = [0, 0], sizes = [1, 96], strides = [1, 1]} : vector<1x128xf32> to vector<1x96xf32>
    %345 = arith.negf %344 : vector<1x96xf32>
    %346 = math.exp %345 : vector<1x96xf32>
    %cst_73 = arith.constant 1.000000e+00 : f32
    %347 = vector.broadcast %cst_73 : f32 to vector<1x96xf32>
    %348 = arith.addf %347, %346 : vector<1x96xf32>
    %349 = arith.divf %347, %348 : vector<1x96xf32>
    %350 = vector.extract_strided_slice %343 {offsets = [0, 96], sizes = [1, 32], strides = [1, 1]} : vector<1x128xf32> to vector<1x32xf32>
    %351 = math.tanh %350 : vector<1x32xf32>
    %352 = vector.extract_strided_slice %349 {offsets = [0, 0], sizes = [1, 32], strides = [1, 1]} : vector<1x96xf32> to vector<1x32xf32>
    %353 = vector.extract_strided_slice %349 {offsets = [0, 32], sizes = [1, 32], strides = [1, 1]} : vector<1x96xf32> to vector<1x32xf32>
    %354 = vector.extract_strided_slice %349 {offsets = [0, 64], sizes = [1, 32], strides = [1, 1]} : vector<1x96xf32> to vector<1x32xf32>
    %355 = arith.mulf %353, %335 : vector<1x32xf32>
    %356 = arith.mulf %352, %351 : vector<1x32xf32>
    %357 = arith.addf %355, %356 : vector<1x32xf32>
    %358 = math.tanh %357 : vector<1x32xf32>
    %359 = arith.mulf %354, %358 : vector<1x32xf32>
    %360 = arith.index_cast %c15_i32 : i32 to index
    %c0_74 = arith.constant 0 : index
    %361 = vector.load %arg8[%360, %c0_74] : memref<16x32xf32, #tpu.memory_space<vmem>>, vector<1x32xf32>
    tpu.vector_store %arg8[%360, %c0_74], %359 {strides = array<i32>} : memref<16x32xf32, #tpu.memory_space<vmem>>, vector<1x32xf32>,
    %c16_i32 = arith.constant 16 : i32
    %c0_75 = arith.constant 0 : index
    %c0_76 = arith.constant 0 : index
    %362 = vector.load %arg8[%c0_75, %c0_76] : memref<16x32xf32, #tpu.memory_space<vmem>>, vector<16x32xf32>
    %c0_77 = arith.constant 0 : index
    %c0_78 = arith.constant 0 : index
    %363 = vector.load %arg4[%c0_77, %c0_78] : memref<32x128xf32, #tpu.memory_space<vmem>>, vector<32x128xf32>
    %cst_79 = arith.constant dense<0.000000e+00> : vector<16x128xf32>
    %364 = tpu.matmul %362, %363, %cst_79 {dimension_numbers = #tpu.dot_dimension_numbers<[1], [0], [0], [1], [0, 0, 1, 1], [], []>} : vector<16x32xf32>, vector<32x128xf32>, vector<16x128xf32> -> vector<16x128xf32>
    %c0_80 = arith.constant 0 : index
    %c0_81 = arith.constant 0 : index
    %365 = vector.load %arg5[%c0_80, %c0_81] : memref<1x128xf32, #tpu.memory_space<vmem>>, vector<1x128xf32>
    %366 = vector.broadcast %365 : vector<1x128xf32> to vector<16x128xf32>
    %367 = arith.addf %364, %366 : vector<16x128xf32>
    %368 = arith.negf %367 : vector<16x128xf32>
    %369 = math.exp %368 : vector<16x128xf32>
    %cst_82 = arith.constant 1.000000e+00 : f32
    %370 = vector.broadcast %cst_82 : f32 to vector<16x128xf32>
    %371 = arith.addf %370, %369 : vector<16x128xf32>
    %372 = arith.divf %370, %371 : vector<16x128xf32>
    %c0_83 = arith.constant 0 : index
    %c0_84 = arith.constant 0 : index
    %373 = vector.load %arg6[%c0_83, %c0_84] : memref<16x128xf32, #tpu.memory_space<vmem>>, vector<16x128xf32>
    tpu.vector_store %arg6[%c0_83, %c0_84], %372 {strides = array<i32>} : memref<16x128xf32, #tpu.memory_space<vmem>>, vector<16x128xf32>,
    return
  }
}

</mosaic_0001>

<bundles_post_ra>
// kernel: tpu_custom_call.1
= control target key start
LH: loop header
LB: loop body
LE: loop exit
PB: predicated region body
PF: predicated region fallthrough
CT: control target
= control target key end

     0   :  { %11 = vsyncpa [#allocation5], 0  ;;  %s2801_s0 = inlined_call_operand.vmem [shape: f32[16,8], index: 0, kind: input, shape index: {}]   ;;  %s2802_s1 = inlined_call_operand.vmem [shape: f32[8,128], index: 1, kind: input, shape index: {}]   ;;  %s2803_s2 = inlined_call_operand.hbm [shape: f32[32,128], index: 2, kind: input, shape index: {}]   ;;  %s2804_s3 = inlined_call_operand.vmem [shape: f32[1,128], index: 3, kind: input, shape index: {}]   ;;  %s2805_s4 = inlined_call_operand.hbm [shape: f32[32,128], index: 4, kind: input, shape index: {}]   ;;  %s2806_s5 = inlined_call_operand.vmem [shape: f32[1,128], index: 5, kind: input, shape index: {}]   ;;  %s2807_s6 = inlined_call_operand.hbm [shape: f32[16,128], index: 6, kind: output, shape index: {}]  }
   0x1   :  { %12 = vsyncpa [#allocation8], 0 }
   0x2   :  { %13 = vsyncpa [#allocation6], 0  ;;  %s2462_s21 = smov [#allocation4]  }
   0x3   :  { %s23_s22 = sshll.u32 %s2462_s21, 4  ;;  %s24_s22 = int_to_ptr.vmem [resolvable:$true] %s23_s22 }
   0x4   :  { %s2404_s23 = scalar_lea.vmem %s24_s22, 512  ;;  %p2409_p1 = scmp.lt.s32.totalorder %s24_s22, %s24_s22 }
   0x5   :  { %p2405_p0 = scmp.ne.s32.totalorder %s24_s22, %s2404_s23  ;;  %p2410_p2 = scmp.lt.s32.totalorder %s2404_s23, %s2404_s23 }
   0x7   :  { %p2411_p3 = por %p2410_p2, %p2409_p1 }
   0x9   :  { %p2412_p4 = pnand %p2411_p3, %p2405_p0 }
   0xb   :  { %2415 = shalt.err (!%p2412_p4)
}
   0xc   :  { %s2463_s24 = smov 128   ;;  %s2464_s25 = smov 8  }
   0xd   :  { %29 = dma.hbm_to_vmem [thread:$0]  %s2803_s2, 512, %s24_s22, [#allocation5], %s2463_s24, %s2463_s24, %s2464_s25  }
   0xe   :  { %s2465_s28 = smov [#allocation7]  }
   0xf   :  { %s37_s29 = sshll.u32 %s2465_s28, 4  ;;  %s38_s29 = int_to_ptr.vmem [resolvable:$true] %s37_s29 }
  0x10   :  { %s2424_s30 = scalar_lea.vmem %s38_s29, 512  ;;  %p2429_p6 = scmp.lt.s32.totalorder %s38_s29, %s38_s29 }
  0x11   :  { %p2425_p5 = scmp.ne.s32.totalorder %s38_s29, %s2424_s30  ;;  %p2430_p7 = scmp.lt.s32.totalorder %s2424_s30, %s2424_s30 }
  0x13   :  { %p2431_p8 = por %p2430_p7, %p2429_p6 }
  0x15   :  { %p2432_p9 = pnand %p2431_p8, %p2425_p5 }
  0x17   :  { %2435 = shalt.err (!%p2432_p9)
}
  0x18   :  { %43 = dma.hbm_to_vmem [thread:$0]  %s2805_s4, 512, %s38_s29, [#allocation8], %s2463_s24, %s2463_s24, %s2464_s25  }
  0x19   :  { %2456 = dma.done.wait [#allocation5], 512  }
  0x1a   :  { %2457 = vsyncadd [#allocation5], 4294966784 }
  0x1b   :  { %2458 = dma.done.wait [#allocation8], 512  }
  0x1c   :  { %2459 = vsyncadd [#allocation8], 4294966784  ;;  %v2466_v0 = vmov 0.0   ;;  %vm2467_vm0 = vmmov 0   ;;  %vm62_vm1 = vcmask 64512   ;;  %v54_v1 = vld [vmem:[%s2802_s1] sm:$0xff] }
  0x1d   :  { %2060 = vmatprep.subr.mxu1 %v2466_v0  ;;  %2068 = vmatprep.mubr.msk.f32.mxu1 %vm2467_vm0, %v2466_v0  ;;  %v52_v2 = vld [vmem:[%s2801_s0] sm:$0xff]  ;;  %v53_v3 = vld [vmem:[%s2801_s0 + $0x8] sm:$0xff]  ;;  %v2530_v4 = vld [vmem:[#allocation4 + $0x18] sm:$0xff]  ;;  %s2468_s13 = smov 32   ;;  %vm254_vm2 = vcmask 253952   ;;  %vm151_vm3 = vcmask 261120  }
  0x1e   :  { %2055 = vmatprep.subr.mxu0 %v54_v1  ;;  %2057 = vmatprep.mubr.msk.f32.mxu0 %vm62_vm1, %v52_v2  ;;  %v2532_v5 = vld [vmem:[#allocation4 + $0x10] sm:$0xff]  ;;  %v2536_v6 = vld [vmem:[#allocation4 + $0x8] sm:$0xff]  ;;  %v2541_v7 = vld [vmem:[#allocation4] sm:$0xff]  ;;  %s2470_s16 = smov [#allocation9]  }
  0x1f   :  { %2056 = vmatpush3.msra.mxu0 %v54_v1  ;;  %2061 = vmatpush3.msra.mxu1 %v2530_v4  ;;  %v1927_v8 = vld [vmem:[%s2804_s3] ss:$0 sm:$0xff]  ;;  %s2469_s3 = smov 64   ;;  %s1914_s17 = sshll.u32 %s2470_s16, 4  ;;  %s1915_s17 = int_to_ptr.vmem [resolvable:$true] %s1914_s17 }
  0x20   :  { %2058 = vmatmul.mubr.msk.f32.vlgmr.msra.gmra.mxu0 %vm62_vm1, %v53_v3  ;;  %2062 = vmatprep.subr.mxu1 %v2466_v0  ;;  %p2441_p11 = scmp.lt.s32.totalorder %s1915_s17, %s1915_s17 }
  0x21   :  { %2063 = vmatpush3.msra.mxu1 %v2532_v5  ;;  %2071 = vmatprep.subr.mxu0 %v2466_v0 }
  0x22   :  { %2064 = vmatprep.subr.mxu1 %v2466_v0  ;;  %2072 = vmatpush3.msra.mxu0 %v2530_v4 }
  0x23   :  { %2065 = vmatpush3.msra.mxu1 %v2536_v6  ;;  %2073 = vmatprep.subr.mxu0 %v2466_v0 }
  0x24   :  { %2066 = vmatprep.subr.mxu1 %v2466_v0  ;;  %2074 = vmatpush3.msra.mxu0 %v2532_v5 }
  0x25   :  { %2067 = vmatpush3.msra.mxu1 %v2541_v7  ;;  %2075 = vmatprep.subr.mxu0 %v2466_v0 }
  0x26   :  { %2069 = vmatmul.mubr.f32.vlgmr.msra.gmra.mxu1 %v2466_v0  ;;  %2076 = vmatpush3.msra.mxu0 %v2536_v6 }
  0x27   :  { %2077 = vmatprep.subr.mxu0 %v2466_v0  ;;  %2079 = vmatprep.mubr.msk.f32.mxu0 %vm2467_vm0, %v2466_v0 }
  0x28   :  { %2078 = vmatpush3.msra.mxu0 %v2541_v7  ;;  %2082 = vmatprep.subr.mxu1 %v2466_v0 }
  0x29   :  { %2083 = vmatpush3.msra.mxu1 %v2530_v4  ;;  %2090 = vmatprep.mubr.msk.f32.mxu1 %vm2467_vm0, %v2466_v0 }
  0x2a   :  { %2084 = vmatprep.subr.mxu1 %v2466_v0  ;;  %2093 = vmatprep.subr.mxu0 %v2466_v0 }
  0x2b   :  { %2085 = vmatpush3.msra.mxu1 %v2532_v5 }
  0x2c   :  { %2086 = vmatprep.subr.mxu1 %v2466_v0 }
  0x2d   :  { %2087 = vmatpush3.msra.mxu1 %v2536_v6 }
  0x2e   :  { %2088 = vmatprep.subr.mxu1 %v2466_v0 }
  0x2f   :  { %2089 = vmatpush3.msra.mxu1 %v2541_v7 }
  0x30   :  { %2104 = vmatprep.subr.mxu1 %v2466_v0 }
  0xe0   :  { %v2059_v9 = vpop.f32.mrf.mxu0 }
  0xe1   :  { %v141_v10 = vadd.f32 %v2059_v9, %v1927_v8 }
  0xe2   :  { %v135_v11 = vpop.f32.mrf.mxu0 }
  0xe3   :  { %145 = vst [vmem:[#allocation2 + $0x8] sm:$0xff] %v141_v10  ;;  %v136_v12 = vadd.f32 %v1927_v8, %v135_v11 }
  0xe5   :  { %144 = vst [vmem:[#allocation2] sm:$0xff] %v136_v12 }
  0xe6   :  { %v221_v13 = vpop.f32.mrf.mxu1 }
  0xe8   :  { %v2070_v14 = vpop.f32.mrf.mxu1 }
  0xec   :  { %v150_v15 = vld [vmem:[#allocation2] sm:$0x1]  ;;  %v256_v31 = vld [vmem:[#allocation2 + $0x1] sm:$0x1]  ;;  %v359_v49 = vld [vmem:[#allocation2 + $0x2] sm:$0x1] }
  0xed   :  { %v225_v16 = vadd.f32 %v221_v13, %v150_v15  ;;  %v462_v8 = vld [vmem:[#allocation2 + $0x3] sm:$0x1] }
  0xef   :  { %2256 = vtanh.f32 %v225_v16  ;;  %v1930_v18 = vmul.f32 -1.442695, %v225_v16 }
  0xf1   :  { %2258 = vpow2.f32 %v1930_v18 }
  0xfc   :  { %v2257_v17 = vpop.eup %2256 }
  0xfd   :  { %235 = vrot.lane.b32.xlu0 %v2257_v17, %s2468_s13 }
  0xfe   :  { %v2259_v19 = vpop.eup %2258 }
  0xff   :  { %v229_v20 = vadd.f32 1.0, %v2259_v19 }
 0x101   :  { %2260 = vrcp.f32 %v229_v20 }
 0x10e   :  { %v2261_v21 = vpop.eup %2260 }
 0x10f   :  { %v233_v24 = vmul.f32 0.0, %v2261_v21 }
 0x16f   :  { %v236_v22 = vpop.permute.xlu0 %235 }
 0x170   :  { %v238_v23 = vmul.f32 %v2261_v21, %v236_v22 }
 0x172   :  { %240 = vrot.lane.b32.xlu0 %v238_v23, %s2468_s13 }
 0x1e4   :  { %v241_v25 = vpop.permute.xlu0 %240 }
 0x1e5   :  { %v243_v26 = vadd.f32 %v241_v25, %v233_v24 }
 0x1e7   :  { %2262 = vtanh.f32 %v243_v26 }
 0x1f4   :  { %v2263_v27 = vpop.eup %2262 }
 0x1f5   :  { %246 = vrot.lane.b32.xlu1 %v2263_v27, %s2468_s13 }
 0x267   :  { %v247_v28 = vpop.permute.xlu1 %246 }
 0x268   :  { %v249_v29 = vmul.f32 %v2261_v21, %v247_v28 }
 0x26a   :  { %251 = vrot.lane.b32.xlu1 %v249_v29, %s2469_s3 }
 0x2dc   :  { %v252_v30 = vpop.permute.xlu1 %251 }
 0x2dd   :  { %255 = vst.msk [vmem:[#allocation3] sm:$0x1] %vm254_vm2, %v252_v30  ;;  %2080 = vmatmul.mubr.msk.f32.vlgmr.msra.gmra.mxu0 %vm151_vm3, %v252_v30 }
 0x2de   :  { %2094 = vmatpush3.msra.mxu0 %v2530_v4  ;;  %2101 = vmatprep.mubr.msk.f32.mxu0 %vm2467_vm0, %v2466_v0 }
 0x2df   :  { %2095 = vmatprep.subr.mxu0 %v2466_v0 }
 0x2e0   :  { %2096 = vmatpush3.msra.mxu0 %v2532_v5 }
 0x2e1   :  { %2097 = vmatprep.subr.mxu0 %v2466_v0 }
 0x2e2   :  { %2098 = vmatpush3.msra.mxu0 %v2536_v6 }
 0x2e3   :  { %2099 = vmatprep.subr.mxu0 %v2466_v0 }
 0x2e4   :  { %2100 = vmatpush3.msra.mxu0 %v2541_v7 }
 0x2e5   :  { %2115 = vmatprep.subr.mxu0 %v2466_v0 }
 0x39d   :  { %v325_v32 = vpop.f32.mrf.mxu0 }
 0x39e   :  { %v329_v33 = vadd.f32 %v325_v32, %v256_v31 }
 0x39f   :  { %v2081_v34 = vpop.f32.mrf.mxu0 }
 0x3a0   :  { %2264 = vtanh.f32 %v329_v33  ;;  %v1932_v36 = vmul.f32 -1.442695, %v329_v33 }
 0x3a2   :  { %2266 = vpow2.f32 %v1932_v36 }
 0x3ad   :  { %v2265_v35 = vpop.eup %2264 }
 0x3ae   :  { %339 = vrot.lane.b32.xlu0 %v2265_v35, %s2468_s13 }
 0x3af   :  { %v2267_v37 = vpop.eup %2266 }
 0x3b0   :  { %v333_v38 = vadd.f32 1.0, %v2267_v37 }
 0x3b2   :  { %2268 = vrcp.f32 %v333_v38 }
 0x3bf   :  { %v2269_v39 = vpop.eup %2268 }
 0x3c0   :  { %v337_v42 = vmul.f32 %v2269_v39, %v243_v26  ;;  %v565_v26 = vld [vmem:[#allocation2 + $0x4] sm:$0x1] }
 0x420   :  { %v340_v40 = vpop.permute.xlu0 %339 }
 0x421   :  { %v342_v41 = vmul.f32 %v2269_v39, %v340_v40 }
 0x423   :  { %344 = vrot.lane.b32.xlu1 %v342_v41, %s2468_s13 }
 0x495   :  { %v345_v43 = vpop.permute.xlu1 %344 }
 0x496   :  { %v347_v44 = vadd.f32 %v345_v43, %v337_v42 }
 0x498   :  { %2270 = vtanh.f32 %v347_v44 }
 0x4a5   :  { %v2271_v45 = vpop.eup %2270 }
 0x4a6   :  { %350 = vrot.lane.b32.xlu0 %v2271_v45, %s2468_s13 }
 0x518   :  { %v351_v46 = vpop.permute.xlu0 %350 }
 0x519   :  { %v353_v47 = vmul.f32 %v2269_v39, %v351_v46 }
 0x51b   :  { %355 = vrot.lane.b32.xlu1 %v353_v47, %s2469_s3 }
 0x58d   :  { %v356_v48 = vpop.permute.xlu1 %355 }
 0x58e   :  { %358 = vst.msk [vmem:[#allocation3 + $0x1] sm:$0x1] %vm254_vm2, %v356_v48  ;;  %2091 = vmatmul.mubr.msk.f32.vlgmr.msra.gmra.mxu1 %vm151_vm3, %v356_v48 }
 0x58f   :  { %2105 = vmatpush3.msra.mxu1 %v2530_v4  ;;  %2112 = vmatprep.mubr.msk.f32.mxu1 %vm2467_vm0, %v2466_v0 }
 0x590   :  { %2106 = vmatprep.subr.mxu1 %v2466_v0 }
 0x591   :  { %2107 = vmatpush3.msra.mxu1 %v2532_v5 }
 0x592   :  { %2108 = vmatprep.subr.mxu1 %v2466_v0 }
 0x593   :  { %2109 = vmatpush3.msra.mxu1 %v2536_v6 }
 0x594   :  { %2110 = vmatprep.subr.mxu1 %v2466_v0 }
 0x595   :  { %2111 = vmatpush3.msra.mxu1 %v2541_v7 }
 0x596   :  { %2126 = vmatprep.subr.mxu1 %v2466_v0 }
 0x64e   :  { %v428_v50 = vpop.f32.mrf.mxu1 }
 0x64f   :  { %v432_v51 = vadd.f32 %v428_v50, %v359_v49 }
 0x650   :  { %v2092_v52 = vpop.f32.mrf.mxu1 }
 0x651   :  { %2272 = vtanh.f32 %v432_v51  ;;  %v1934_v54 = vmul.f32 -1.442695, %v432_v51 }
 0x653   :  { %2274 = vpow2.f32 %v1934_v54 }
 0x65e   :  { %v2273_v53 = vpop.eup %2272 }
 0x65f   :  { %442 = vrot.lane.b32.xlu0 %v2273_v53, %s2468_s13 }
 0x660   :  { %v2275_v55 = vpop.eup %2274 }
 0x661   :  { %v436_v56 = vadd.f32 1.0, %v2275_v55 }
 0x663   :  { %2276 = vrcp.f32 %v436_v56 }
 0x670   :  { %v2277_v57 = vpop.eup %2276 }
 0x671   :  { %v440_v60 = vmul.f32 %v2277_v57, %v347_v44  ;;  %v668_v44 = vld [vmem:[#allocation2 + $0x5] sm:$0x1] }
 0x6d1   :  { %v443_v58 = vpop.permute.xlu0 %442 }
 0x6d2   :  { %v445_v59 = vmul.f32 %v2277_v57, %v443_v58 }
 0x6d4   :  { %447 = vrot.lane.b32.xlu1 %v445_v59, %s2468_s13 }
 0x746   :  { %v448_v61 = vpop.permute.xlu1 %447 }
 0x747   :  { %v450_v62 = vadd.f32 %v448_v61, %v440_v60 }
 0x749   :  { %2278 = vtanh.f32 %v450_v62 }
 0x756   :  { %v2279_v63 = vpop.eup %2278 }
 0x757   :  { %453 = vrot.lane.b32.xlu0 %v2279_v63, %s2468_s13 }
 0x7c9   :  { %v454_v1 = vpop.permute.xlu0 %453 }
 0x7ca   :  { %v456_v2 = vmul.f32 %v2277_v57, %v454_v1 }
 0x7cc   :  { %458 = vrot.lane.b32.xlu1 %v456_v2, %s2469_s3 }
 0x83e   :  { %v459_v3 = vpop.permute.xlu1 %458 }
 0x83f   :  { %461 = vst.msk [vmem:[#allocation3 + $0x2] sm:$0x1] %vm254_vm2, %v459_v3  ;;  %2102 = vmatmul.mubr.msk.f32.vlgmr.msra.gmra.mxu0 %vm151_vm3, %v459_v3 }
 0x840   :  { %2116 = vmatpush3.msra.mxu0 %v2530_v4  ;;  %2123 = vmatprep.mubr.msk.f32.mxu0 %vm2467_vm0, %v2466_v0 }
 0x841   :  { %2117 = vmatprep.subr.mxu0 %v2466_v0 }
 0x842   :  { %2118 = vmatpush3.msra.mxu0 %v2532_v5 }
 0x843   :  { %2119 = vmatprep.subr.mxu0 %v2466_v0 }
 0x844   :  { %2120 = vmatpush3.msra.mxu0 %v2536_v6 }
 0x845   :  { %2121 = vmatprep.subr.mxu0 %v2466_v0 }
 0x846   :  { %2122 = vmatpush3.msra.mxu0 %v2541_v7 }
 0x847   :  { %2137 = vmatprep.subr.mxu0 %v2466_v0 }
 0x8ff   :  { %v531_v9 = vpop.f32.mrf.mxu0 }
 0x900   :  { %v535_v10 = vadd.f32 %v531_v9, %v462_v8 }
 0x901   :  { %v2103_v11 = vpop.f32.mrf.mxu0 }
 0x902   :  { %2280 = vtanh.f32 %v535_v10  ;;  %v1936_v13 = vmul.f32 -1.442695, %v535_v10 }
 0x904   :  { %2282 = vpow2.f32 %v1936_v13 }
 0x90f   :  { %v2281_v12 = vpop.eup %2280 }
 0x910   :  { %545 = vrot.lane.b32.xlu0 %v2281_v12, %s2468_s13 }
 0x911   :  { %v2283_v14 = vpop.eup %2282 }
 0x912   :  { %v539_v15 = vadd.f32 1.0, %v2283_v14 }
 0x914   :  { %2284 = vrcp.f32 %v539_v15 }
 0x921   :  { %v2285_v16 = vpop.eup %2284 }
 0x922   :  { %v543_v19 = vmul.f32 %v2285_v16, %v450_v62  ;;  %v771_v62 = vld [vmem:[#allocation2 + $0x6] sm:$0x1] }
 0x982   :  { %v546_v17 = vpop.permute.xlu0 %545 }
 0x983   :  { %v548_v18 = vmul.f32 %v2285_v16, %v546_v17 }
 0x985   :  { %550 = vrot.lane.b32.xlu1 %v548_v18, %s2468_s13 }
 0x9f7   :  { %v551_v20 = vpop.permute.xlu1 %550 }
 0x9f8   :  { %v553_v21 = vadd.f32 %v551_v20, %v543_v19 }
 0x9fa   :  { %2286 = vtanh.f32 %v553_v21 }
 0xa07   :  { %v2287_v22 = vpop.eup %2286 }
 0xa08   :  { %556 = vrot.lane.b32.xlu0 %v2287_v22, %s2468_s13 }
 0xa7a   :  { %v557_v23 = vpop.permute.xlu0 %556 }
 0xa7b   :  { %v559_v24 = vmul.f32 %v2285_v16, %v557_v23 }
 0xa7d   :  { %561 = vrot.lane.b32.xlu1 %v559_v24, %s2469_s3 }
 0xaef   :  { %v562_v25 = vpop.permute.xlu1 %561 }
 0xaf0   :  { %564 = vst.msk [vmem:[#allocation3 + $0x3] sm:$0x1] %vm254_vm2, %v562_v25  ;;  %2113 = vmatmul.mubr.msk.f32.vlgmr.msra.gmra.mxu1 %vm151_vm3, %v562_v25 }
 0xaf1   :  { %2127 = vmatpush3.msra.mxu1 %v2530_v4  ;;  %2134 = vmatprep.mubr.msk.f32.mxu1 %vm2467_vm0, %v2466_v0 }
 0xaf2   :  { %2128 = vmatprep.subr.mxu1 %v2466_v0 }
 0xaf3   :  { %2129 = vmatpush3.msra.mxu1 %v2532_v5 }
 0xaf4   :  { %2130 = vmatprep.subr.mxu1 %v2466_v0 }
 0xaf5   :  { %2131 = vmatpush3.msra.mxu1 %v2536_v6 }
 0xaf6   :  { %2132 = vmatprep.subr.mxu1 %v2466_v0 }
 0xaf7   :  { %2133 = vmatpush3.msra.mxu1 %v2541_v7 }
 0xaf8   :  { %2148 = vmatprep.subr.mxu1 %v2466_v0 }
 0xbb0   :  { %v634_v27 = vpop.f32.mrf.mxu1 }
 0xbb1   :  { %v638_v28 = vadd.f32 %v634_v27, %v565_v26 }
 0xbb2   :  { %v2114_v29 = vpop.f32.mrf.mxu1 }
 0xbb3   :  { %2288 = vtanh.f32 %v638_v28  ;;  %v1938_v31 = vmul.f32 -1.442695, %v638_v28 }
 0xbb5   :  { %2290 = vpow2.f32 %v1938_v31 }
 0xbc0   :  { %v2289_v30 = vpop.eup %2288 }
 0xbc1   :  { %648 = vrot.lane.b32.xlu0 %v2289_v30, %s2468_s13 }
 0xbc2   :  { %v2291_v32 = vpop.eup %2290 }
 0xbc3   :  { %v642_v33 = vadd.f32 1.0, %v2291_v32 }
 0xbc5   :  { %2292 = vrcp.f32 %v642_v33 }
 0xbd2   :  { %v2293_v34 = vpop.eup %2292 }
 0xbd3   :  { %v646_v37 = vmul.f32 %v2293_v34, %v553_v21  ;;  %v874_v21 = vld [vmem:[#allocation2 + $0x7] sm:$0x1] }
 0xc33   :  { %v649_v35 = vpop.permute.xlu0 %648 }
 0xc34   :  { %v651_v36 = vmul.f32 %v2293_v34, %v649_v35 }
 0xc36   :  { %653 = vrot.lane.b32.xlu1 %v651_v36, %s2468_s13 }
 0xca8   :  { %v654_v38 = vpop.permute.xlu1 %653 }
 0xca9   :  { %v656_v39 = vadd.f32 %v654_v38, %v646_v37 }
 0xcab   :  { %2294 = vtanh.f32 %v656_v39 }
 0xcb8   :  { %v2295_v40 = vpop.eup %2294 }
 0xcb9   :  { %659 = vrot.lane.b32.xlu0 %v2295_v40, %s2468_s13 }
 0xd2b   :  { %v660_v41 = vpop.permute.xlu0 %659 }
 0xd2c   :  { %v662_v42 = vmul.f32 %v2293_v34, %v660_v41 }
 0xd2e   :  { %664 = vrot.lane.b32.xlu1 %v662_v42, %s2469_s3 }
 0xda0   :  { %v665_v43 = vpop.permute.xlu1 %664 }
 0xda1   :  { %667 = vst.msk [vmem:[#allocation3 + $0x4] sm:$0x1] %vm254_vm2, %v665_v43  ;;  %2124 = vmatmul.mubr.msk.f32.vlgmr.msra.gmra.mxu0 %vm151_vm3, %v665_v43 }
 0xda2   :  { %2138 = vmatpush3.msra.mxu0 %v2530_v4  ;;  %2145 = vmatprep.mubr.msk.f32.mxu0 %vm2467_vm0, %v2466_v0 }
 0xda3   :  { %2139 = vmatprep.subr.mxu0 %v2466_v0 }
 0xda4   :  { %2140 = vmatpush3.msra.mxu0 %v2532_v5 }
 0xda5   :  { %2141 = vmatprep.subr.mxu0 %v2466_v0 }
 0xda6   :  { %2142 = vmatpush3.msra.mxu0 %v2536_v6 }
 0xda7   :  { %2143 = vmatprep.subr.mxu0 %v2466_v0 }
 0xda8   :  { %2144 = vmatpush3.msra.mxu0 %v2541_v7 }
 0xda9   :  { %2159 = vmatprep.subr.mxu0 %v2466_v0 }
 0xe61   :  { %v737_v45 = vpop.f32.mrf.mxu0 }
 0xe62   :  { %v741_v46 = vadd.f32 %v737_v45, %v668_v44 }
 0xe63   :  { %v2125_v47 = vpop.f32.mrf.mxu0 }
 0xe64   :  { %2296 = vtanh.f32 %v741_v46  ;;  %v1940_v49 = vmul.f32 -1.442695, %v741_v46 }
 0xe66   :  { %2298 = vpow2.f32 %v1940_v49 }
 0xe71   :  { %v2297_v48 = vpop.eup %2296 }
 0xe72   :  { %751 = vrot.lane.b32.xlu0 %v2297_v48, %s2468_s13 }
 0xe73   :  { %v2299_v50 = vpop.eup %2298 }
 0xe74   :  { %v745_v51 = vadd.f32 1.0, %v2299_v50 }
 0xe76   :  { %2300 = vrcp.f32 %v745_v51 }
 0xe83   :  { %v2301_v52 = vpop.eup %2300 }
 0xe84   :  { %v749_v55 = vmul.f32 %v2301_v52, %v656_v39  ;;  %v977_v39 = vld [vmem:[#allocation2 + $0x8] sm:$0x1] }
 0xee4   :  { %v752_v53 = vpop.permute.xlu0 %751 }
 0xee5   :  { %v754_v54 = vmul.f32 %v2301_v52, %v752_v53 }
 0xee7   :  { %756 = vrot.lane.b32.xlu1 %v754_v54, %s2468_s13 }
 0xf59   :  { %v757_v56 = vpop.permute.xlu1 %756 }
 0xf5a   :  { %v759_v57 = vadd.f32 %v757_v56, %v749_v55 }
 0xf5c   :  { %2302 = vtanh.f32 %v759_v57 }
 0xf69   :  { %v2303_v58 = vpop.eup %2302 }
 0xf6a   :  { %762 = vrot.lane.b32.xlu0 %v2303_v58, %s2468_s13 }
 0xfdc   :  { %v763_v59 = vpop.permute.xlu0 %762 }
 0xfdd   :  { %v765_v60 = vmul.f32 %v2301_v52, %v763_v59 }
 0xfdf   :  { %767 = vrot.lane.b32.xlu1 %v765_v60, %s2469_s3 }
0x1051   :  { %v768_v61 = vpop.permute.xlu1 %767 }
0x1052   :  { %770 = vst.msk [vmem:[#allocation3 + $0x5] sm:$0x1] %vm254_vm2, %v768_v61  ;;  %2135 = vmatmul.mubr.msk.f32.vlgmr.msra.gmra.mxu1 %vm151_vm3, %v768_v61 }
0x1053   :  { %2149 = vmatpush3.msra.mxu1 %v2530_v4  ;;  %2156 = vmatprep.mubr.msk.f32.mxu1 %vm2467_vm0, %v2466_v0 }
0x1054   :  { %2150 = vmatprep.subr.mxu1 %v2466_v0 }
0x1055   :  { %2151 = vmatpush3.msra.mxu1 %v2532_v5 }
0x1056   :  { %2152 = vmatprep.subr.mxu1 %v2466_v0 }
0x1057   :  { %2153 = vmatpush3.msra.mxu1 %v2536_v6 }
0x1058   :  { %2154 = vmatprep.subr.mxu1 %v2466_v0 }
0x1059   :  { %2155 = vmatpush3.msra.mxu1 %v2541_v7 }
0x105a   :  { %2170 = vmatprep.subr.mxu1 %v2466_v0 }
0x1112   :  { %v840_v63 = vpop.f32.mrf.mxu1 }
0x1113   :  { %v844_v1 = vadd.f32 %v840_v63, %v771_v62 }
0x1114   :  { %v2136_v2 = vpop.f32.mrf.mxu1 }
0x1115   :  { %2304 = vtanh.f32 %v844_v1  ;;  %v1942_v8 = vmul.f32 -1.442695, %v844_v1 }
0x1117   :  { %2306 = vpow2.f32 %v1942_v8 }
0x1122   :  { %v2305_v3 = vpop.eup %2304 }
0x1123   :  { %854 = vrot.lane.b32.xlu0 %v2305_v3, %s2468_s13 }
0x1124   :  { %v2307_v9 = vpop.eup %2306 }
0x1125   :  { %v848_v10 = vadd.f32 1.0, %v2307_v9 }
0x1127   :  { %2308 = vrcp.f32 %v848_v10 }
0x1134   :  { %v2309_v11 = vpop.eup %2308 }
0x1135   :  { %v852_v14 = vmul.f32 %v2309_v11, %v759_v57  ;;  %v1080_v57 = vld [vmem:[#allocation2 + $0x9] sm:$0x1] }
0x1195   :  { %v855_v12 = vpop.permute.xlu0 %854 }
0x1196   :  { %v857_v13 = vmul.f32 %v2309_v11, %v855_v12 }
0x1198   :  { %859 = vrot.lane.b32.xlu1 %v857_v13, %s2468_s13 }
0x120a   :  { %v860_v15 = vpop.permute.xlu1 %859 }
0x120b   :  { %v862_v16 = vadd.f32 %v860_v15, %v852_v14 }
0x120d   :  { %2310 = vtanh.f32 %v862_v16 }
0x121a   :  { %v2311_v17 = vpop.eup %2310 }
0x121b   :  { %865 = vrot.lane.b32.xlu0 %v2311_v17, %s2468_s13 }
0x128d   :  { %v866_v18 = vpop.permute.xlu0 %865 }
0x128e   :  { %v868_v19 = vmul.f32 %v2309_v11, %v866_v18 }
0x1290   :  { %870 = vrot.lane.b32.xlu1 %v868_v19, %s2469_s3 }
0x1302   :  { %v871_v20 = vpop.permute.xlu1 %870 }
0x1303   :  { %873 = vst.msk [vmem:[#allocation3 + $0x6] sm:$0x1] %vm254_vm2, %v871_v20  ;;  %2146 = vmatmul.mubr.msk.f32.vlgmr.msra.gmra.mxu0 %vm151_vm3, %v871_v20 }
0x1304   :  { %2160 = vmatpush3.msra.mxu0 %v2530_v4  ;;  %2167 = vmatprep.mubr.msk.f32.mxu0 %vm2467_vm0, %v2466_v0 }
0x1305   :  { %2161 = vmatprep.subr.mxu0 %v2466_v0 }
0x1306   :  { %2162 = vmatpush3.msra.mxu0 %v2532_v5 }
0x1307   :  { %2163 = vmatprep.subr.mxu0 %v2466_v0 }
0x1308   :  { %2164 = vmatpush3.msra.mxu0 %v2536_v6 }
0x1309   :  { %2165 = vmatprep.subr.mxu0 %v2466_v0 }
0x130a   :  { %2166 = vmatpush3.msra.mxu0 %v2541_v7 }
0x130b   :  { %2181 = vmatprep.subr.mxu0 %v2466_v0 }
0x13c3   :  { %v943_v22 = vpop.f32.mrf.mxu0 }
0x13c4   :  { %v947_v23 = vadd.f32 %v943_v22, %v874_v21 }
0x13c5   :  { %v2147_v24 = vpop.f32.mrf.mxu0 }
0x13c6   :  { %2312 = vtanh.f32 %v947_v23  ;;  %v1944_v26 = vmul.f32 -1.442695, %v947_v23 }
0x13c8   :  { %2314 = vpow2.f32 %v1944_v26 }
0x13d3   :  { %v2313_v25 = vpop.eup %2312 }
0x13d4   :  { %957 = vrot.lane.b32.xlu0 %v2313_v25, %s2468_s13 }
0x13d5   :  { %v2315_v27 = vpop.eup %2314 }
0x13d6   :  { %v951_v28 = vadd.f32 1.0, %v2315_v27 }
0x13d8   :  { %2316 = vrcp.f32 %v951_v28 }
0x13e5   :  { %v2317_v29 = vpop.eup %2316 }
0x13e6   :  { %v955_v32 = vmul.f32 %v2317_v29, %v862_v16  ;;  %v1183_v16 = vld [vmem:[#allocation2 + $0xa] sm:$0x1] }
0x1446   :  { %v958_v30 = vpop.permute.xlu0 %957 }
0x1447   :  { %v960_v31 = vmul.f32 %v2317_v29, %v958_v30 }
0x1449   :  { %962 = vrot.lane.b32.xlu1 %v960_v31, %s2468_s13 }
0x14bb   :  { %v963_v33 = vpop.permute.xlu1 %962 }
0x14bc   :  { %v965_v34 = vadd.f32 %v963_v33, %v955_v32 }
0x14be   :  { %2318 = vtanh.f32 %v965_v34 }
0x14cb   :  { %v2319_v35 = vpop.eup %2318 }
0x14cc   :  { %968 = vrot.lane.b32.xlu0 %v2319_v35, %s2468_s13 }
0x153e   :  { %v969_v36 = vpop.permute.xlu0 %968 }
0x153f   :  { %v971_v37 = vmul.f32 %v2317_v29, %v969_v36 }
0x1541   :  { %973 = vrot.lane.b32.xlu1 %v971_v37, %s2469_s3 }
0x15b3   :  { %v974_v38 = vpop.permute.xlu1 %973 }
0x15b4   :  { %976 = vst.msk [vmem:[#allocation3 + $0x7] sm:$0x1] %vm254_vm2, %v974_v38  ;;  %2157 = vmatmul.mubr.msk.f32.vlgmr.msra.gmra.mxu1 %vm151_vm3, %v974_v38 }
0x15b5   :  { %2171 = vmatpush3.msra.mxu1 %v2530_v4  ;;  %2178 = vmatprep.mubr.msk.f32.mxu1 %vm2467_vm0, %v2466_v0 }
0x15b6   :  { %2172 = vmatprep.subr.mxu1 %v2466_v0 }
0x15b7   :  { %2173 = vmatpush3.msra.mxu1 %v2532_v5 }
0x15b8   :  { %2174 = vmatprep.subr.mxu1 %v2466_v0 }
0x15b9   :  { %2175 = vmatpush3.msra.mxu1 %v2536_v6 }
0x15ba   :  { %2176 = vmatprep.subr.mxu1 %v2466_v0 }
0x15bb   :  { %2177 = vmatpush3.msra.mxu1 %v2541_v7 }
0x15bc   :  { %2192 = vmatprep.subr.mxu1 %v2466_v0 }
0x1674   :  { %v1046_v40 = vpop.f32.mrf.mxu1 }
0x1675   :  { %v1050_v41 = vadd.f32 %v1046_v40, %v977_v39 }
0x1676   :  { %v2158_v42 = vpop.f32.mrf.mxu1 }
0x1677   :  { %2320 = vtanh.f32 %v1050_v41  ;;  %v1946_v44 = vmul.f32 -1.442695, %v1050_v41 }
0x1679   :  { %2322 = vpow2.f32 %v1946_v44 }
0x1684   :  { %v2321_v43 = vpop.eup %2320 }
0x1685   :  { %1060 = vrot.lane.b32.xlu0 %v2321_v43, %s2468_s13 }
0x1686   :  { %v2323_v45 = vpop.eup %2322 }
0x1687   :  { %v1054_v46 = vadd.f32 1.0, %v2323_v45 }
0x1689   :  { %2324 = vrcp.f32 %v1054_v46 }
0x1696   :  { %v2325_v47 = vpop.eup %2324 }
0x1697   :  { %v1058_v50 = vmul.f32 %v2325_v47, %v965_v34  ;;  %v1286_v34 = vld [vmem:[#allocation2 + $0xb] sm:$0x1] }
0x16f7   :  { %v1061_v48 = vpop.permute.xlu0 %1060 }
0x16f8   :  { %v1063_v49 = vmul.f32 %v2325_v47, %v1061_v48 }
0x16fa   :  { %1065 = vrot.lane.b32.xlu1 %v1063_v49, %s2468_s13 }
0x176c   :  { %v1066_v51 = vpop.permute.xlu1 %1065 }
0x176d   :  { %v1068_v52 = vadd.f32 %v1066_v51, %v1058_v50 }
0x176f   :  { %2326 = vtanh.f32 %v1068_v52 }
0x177c   :  { %v2327_v53 = vpop.eup %2326 }
0x177d   :  { %1071 = vrot.lane.b32.xlu0 %v2327_v53, %s2468_s13 }
0x17ef   :  { %v1072_v54 = vpop.permute.xlu0 %1071 }
0x17f0   :  { %v1074_v55 = vmul.f32 %v2325_v47, %v1072_v54 }
0x17f2   :  { %1076 = vrot.lane.b32.xlu1 %v1074_v55, %s2469_s3 }
0x1864   :  { %v1077_v56 = vpop.permute.xlu1 %1076 }
0x1865   :  { %1079 = vst.msk [vmem:[#allocation3 + $0x8] sm:$0x1] %vm254_vm2, %v1077_v56  ;;  %2168 = vmatmul.mubr.msk.f32.vlgmr.msra.gmra.mxu0 %vm151_vm3, %v1077_v56 }
0x1866   :  { %2182 = vmatpush3.msra.mxu0 %v2530_v4  ;;  %2189 = vmatprep.mubr.msk.f32.mxu0 %vm2467_vm0, %v2466_v0 }
0x1867   :  { %2183 = vmatprep.subr.mxu0 %v2466_v0 }
0x1868   :  { %2184 = vmatpush3.msra.mxu0 %v2532_v5 }
0x1869   :  { %2185 = vmatprep.subr.mxu0 %v2466_v0 }
0x186a   :  { %2186 = vmatpush3.msra.mxu0 %v2536_v6 }
0x186b   :  { %2187 = vmatprep.subr.mxu0 %v2466_v0 }
0x186c   :  { %2188 = vmatpush3.msra.mxu0 %v2541_v7 }
0x186d   :  { %2203 = vmatprep.subr.mxu0 %v2466_v0 }
0x1925   :  { %v1149_v58 = vpop.f32.mrf.mxu0 }
0x1926   :  { %v1153_v59 = vadd.f32 %v1149_v58, %v1080_v57 }
0x1927   :  { %v2169_v60 = vpop.f32.mrf.mxu0 }
0x1928   :  { %2328 = vtanh.f32 %v1153_v59  ;;  %v1948_v62 = vmul.f32 -1.442695, %v1153_v59 }
0x192a   :  { %2330 = vpow2.f32 %v1948_v62 }
0x1935   :  { %v2329_v61 = vpop.eup %2328 }
0x1936   :  { %1163 = vrot.lane.b32.xlu0 %v2329_v61, %s2468_s13 }
0x1937   :  { %v2331_v63 = vpop.eup %2330 }
0x1938   :  { %v1157_v1 = vadd.f32 1.0, %v2331_v63 }
0x193a   :  { %2332 = vrcp.f32 %v1157_v1 }
0x1947   :  { %v2333_v2 = vpop.eup %2332 }
0x1948   :  { %v1161_v9 = vmul.f32 %v2333_v2, %v1068_v52  ;;  %v1389_v52 = vld [vmem:[#allocation2 + $0xc] sm:$0x1] }
0x19a8   :  { %v1164_v3 = vpop.permute.xlu0 %1163 }
0x19a9   :  { %v1166_v8 = vmul.f32 %v2333_v2, %v1164_v3  ;;  %v2392_v3 = vld [vmem:[#allocation4 + $0x18] sm:$0xff] }
0x19ab   :  { %1168 = vrot.lane.b32.xlu1 %v1166_v8, %s2468_s13  ;;  %v2393_v8 = vld [vmem:[#allocation4 + $0x10] sm:$0xff] }
0x1a1d   :  { %v1169_v10 = vpop.permute.xlu1 %1168 }
0x1a1e   :  { %v1171_v11 = vadd.f32 %v1169_v10, %v1161_v9  ;;  %v2394_v9 = vld [vmem:[#allocation4 + $0x8] sm:$0xff]  ;;  %v2395_v10 = vld [vmem:[#allocation4] sm:$0xff] }
0x1a20   :  { %2334 = vtanh.f32 %v1171_v11 }
0x1a2d   :  { %v2335_v12 = vpop.eup %2334 }
0x1a2e   :  { %1174 = vrot.lane.b32.xlu0 %v2335_v12, %s2468_s13 }
0x1aa0   :  { %v1175_v13 = vpop.permute.xlu0 %1174 }
0x1aa1   :  { %v1177_v14 = vmul.f32 %v2333_v2, %v1175_v13 }
0x1aa3   :  { %1179 = vrot.lane.b32.xlu1 %v1177_v14, %s2469_s3 }
0x1b15   :  { %v1180_v15 = vpop.permute.xlu1 %1179 }
0x1b16   :  { %1182 = vst.msk [vmem:[#allocation3 + $0x9] sm:$0x1] %vm254_vm2, %v1180_v15  ;;  %2179 = vmatmul.mubr.msk.f32.vlgmr.msra.gmra.mxu1 %vm151_vm3, %v1180_v15 }
0x1b17   :  { %2193 = vmatpush3.msra.mxu1 %v2530_v4  ;;  %2200 = vmatprep.mubr.msk.f32.mxu1 %vm2467_vm0, %v2466_v0 }
0x1b18   :  { %2194 = vmatprep.subr.mxu1 %v2466_v0 }
0x1b19   :  { %2195 = vmatpush3.msra.mxu1 %v2532_v5 }
0x1b1a   :  { %2196 = vmatprep.subr.mxu1 %v2466_v0 }
0x1b1b   :  { %2197 = vmatpush3.msra.mxu1 %v2536_v6 }
0x1b1c   :  { %2198 = vmatprep.subr.mxu1 %v2466_v0 }
0x1b1d   :  { %2199 = vmatpush3.msra.mxu1 %v2541_v7 }
0x1b1e   :  { %2214 = vmatprep.subr.mxu1 %v2466_v0 }
0x1bd6   :  { %v1252_v17 = vpop.f32.mrf.mxu1 }
0x1bd7   :  { %v1256_v18 = vadd.f32 %v1252_v17, %v1183_v16 }
0x1bd8   :  { %v2180_v19 = vpop.f32.mrf.mxu1 }
0x1bd9   :  { %2336 = vtanh.f32 %v1256_v18  ;;  %v1950_v21 = vmul.f32 -1.442695, %v1256_v18 }
0x1bdb   :  { %2338 = vpow2.f32 %v1950_v21 }
0x1be6   :  { %v2337_v20 = vpop.eup %2336 }
0x1be7   :  { %1266 = vrot.lane.b32.xlu0 %v2337_v20, %s2468_s13 }
0x1be8   :  { %v2339_v22 = vpop.eup %2338 }
0x1be9   :  { %v1260_v23 = vadd.f32 1.0, %v2339_v22 }
0x1beb   :  { %2340 = vrcp.f32 %v1260_v23 }
0x1bf8   :  { %v2341_v24 = vpop.eup %2340 }
0x1bf9   :  { %v1264_v27 = vmul.f32 %v2341_v24, %v1171_v11  ;;  %v1492_v11 = vld [vmem:[#allocation2 + $0xd] sm:$0x1] }
0x1c59   :  { %v1267_v25 = vpop.permute.xlu0 %1266 }
0x1c5a   :  { %v1269_v26 = vmul.f32 %v2341_v24, %v1267_v25 }
0x1c5c   :  { %1271 = vrot.lane.b32.xlu1 %v1269_v26, %s2468_s13 }
0x1cce   :  { %v1272_v28 = vpop.permute.xlu1 %1271 }
0x1ccf   :  { %v1274_v29 = vadd.f32 %v1272_v28, %v1264_v27  ;;  %v1801_v28 = vld [vmem:[#allocation3] sm:$0xff] }
0x1cd1   :  { %2342 = vtanh.f32 %v1274_v29 }
0x1cde   :  { %v2343_v30 = vpop.eup %2342 }
0x1cdf   :  { %1277 = vrot.lane.b32.xlu0 %v2343_v30, %s2468_s13 }
0x1d51   :  { %v1278_v31 = vpop.permute.xlu0 %1277 }
0x1d52   :  { %v1280_v32 = vmul.f32 %v2341_v24, %v1278_v31 }
0x1d54   :  { %1282 = vrot.lane.b32.xlu1 %v1280_v32, %s2469_s3 }
0x1dc6   :  { %v1283_v33 = vpop.permute.xlu1 %1282 }
0x1dc7   :  { %1285 = vst.msk [vmem:[#allocation3 + $0xa] sm:$0x1] %vm254_vm2, %v1283_v33  ;;  %2190 = vmatmul.mubr.msk.f32.vlgmr.msra.gmra.mxu0 %vm151_vm3, %v1283_v33 }
0x1dc8   :  { %2204 = vmatpush3.msra.mxu0 %v2530_v4  ;;  %2211 = vmatprep.mubr.msk.f32.mxu0 %vm2467_vm0, %v2466_v0 }
0x1dc9   :  { %2205 = vmatprep.subr.mxu0 %v2466_v0 }
0x1dca   :  { %2206 = vmatpush3.msra.mxu0 %v2532_v5 }
0x1dcb   :  { %2207 = vmatprep.subr.mxu0 %v2466_v0 }
0x1dcc   :  { %2208 = vmatpush3.msra.mxu0 %v2536_v6 }
0x1dcd   :  { %2209 = vmatprep.subr.mxu0 %v2466_v0 }
0x1dce   :  { %2210 = vmatpush3.msra.mxu0 %v2541_v7 }
0x1dcf   :  { %2225 = vmatprep.subr.mxu0 %v2466_v0 }
0x1e87   :  { %v1355_v35 = vpop.f32.mrf.mxu0 }
0x1e88   :  { %v1359_v36 = vadd.f32 %v1355_v35, %v1286_v34 }
0x1e89   :  { %v2191_v37 = vpop.f32.mrf.mxu0 }
0x1e8a   :  { %2344 = vtanh.f32 %v1359_v36  ;;  %v1952_v39 = vmul.f32 -1.442695, %v1359_v36 }
0x1e8c   :  { %2346 = vpow2.f32 %v1952_v39 }
0x1e97   :  { %v2345_v38 = vpop.eup %2344 }
0x1e98   :  { %1369 = vrot.lane.b32.xlu0 %v2345_v38, %s2468_s13 }
0x1e99   :  { %v2347_v40 = vpop.eup %2346 }
0x1e9a   :  { %v1363_v41 = vadd.f32 1.0, %v2347_v40 }
0x1e9c   :  { %2348 = vrcp.f32 %v1363_v41 }
0x1ea9   :  { %v2349_v42 = vpop.eup %2348 }
0x1eaa   :  { %v1367_v45 = vmul.f32 %v2349_v42, %v1274_v29  ;;  %v1595_v29 = vld [vmem:[#allocation2 + $0xe] sm:$0x1] }
0x1f0a   :  { %v1370_v43 = vpop.permute.xlu0 %1369 }
0x1f0b   :  { %v1372_v44 = vmul.f32 %v2349_v42, %v1370_v43 }
0x1f0d   :  { %1374 = vrot.lane.b32.xlu1 %v1372_v44, %s2468_s13 }
0x1f7f   :  { %v1375_v46 = vpop.permute.xlu1 %1374 }
0x1f80   :  { %v1377_v47 = vadd.f32 %v1375_v46, %v1367_v45 }
0x1f82   :  { %2350 = vtanh.f32 %v1377_v47 }
0x1f8f   :  { %v2351_v48 = vpop.eup %2350 }
0x1f90   :  { %1380 = vrot.lane.b32.xlu0 %v2351_v48, %s2468_s13 }
0x2002   :  { %v1381_v49 = vpop.permute.xlu0 %1380 }
0x2003   :  { %v1383_v50 = vmul.f32 %v2349_v42, %v1381_v49 }
0x2005   :  { %1385 = vrot.lane.b32.xlu1 %v1383_v50, %s2469_s3 }
0x2077   :  { %v1386_v51 = vpop.permute.xlu1 %1385 }
0x2078   :  { %1388 = vst.msk [vmem:[#allocation3 + $0xb] sm:$0x1] %vm254_vm2, %v1386_v51  ;;  %2201 = vmatmul.mubr.msk.f32.vlgmr.msra.gmra.mxu1 %vm151_vm3, %v1386_v51 }
0x2079   :  { %2215 = vmatpush3.msra.mxu1 %v2530_v4  ;;  %2222 = vmatprep.mubr.msk.f32.mxu1 %vm2467_vm0, %v2466_v0 }
0x207a   :  { %2216 = vmatprep.subr.mxu1 %v2466_v0 }
0x207b   :  { %2217 = vmatpush3.msra.mxu1 %v2532_v5 }
0x207c   :  { %2218 = vmatprep.subr.mxu1 %v2466_v0 }
0x207d   :  { %2219 = vmatpush3.msra.mxu1 %v2536_v6 }
0x207e   :  { %2220 = vmatprep.subr.mxu1 %v2466_v0 }
0x207f   :  { %2221 = vmatpush3.msra.mxu1 %v2541_v7 }
0x2138   :  { %v1458_v53 = vpop.f32.mrf.mxu1 }
0x2139   :  { %v1462_v54 = vadd.f32 %v1458_v53, %v1389_v52 }
0x213a   :  { %v2202_v55 = vpop.f32.mrf.mxu1 }
0x213b   :  { %2352 = vtanh.f32 %v1462_v54  ;;  %v1954_v56 = vmul.f32 -1.442695, %v1462_v54 }
0x213d   :  { %2354 = vpow2.f32 %v1954_v56 }
0x2148   :  { %v2353_v4 = vpop.eup %2352 }
0x2149   :  { %1472 = vrot.lane.b32.xlu0 %v2353_v4, %s2468_s13 }
0x214a   :  { %v2355_v57 = vpop.eup %2354 }
0x214b   :  { %v1466_v5 = vadd.f32 1.0, %v2355_v57 }
0x214d   :  { %2356 = vrcp.f32 %v1466_v5 }
0x215a   :  { %v2357_v58 = vpop.eup %2356 }
0x215b   :  { %v1470_v60 = vmul.f32 %v2357_v58, %v1377_v47  ;;  %v1698_v47 = vld [vmem:[#allocation2 + $0xf] sm:$0x1] }
0x21bb   :  { %v1473_v59 = vpop.permute.xlu0 %1472 }
0x21bc   :  { %v1475_v6 = vmul.f32 %v2357_v58, %v1473_v59 }
0x21be   :  { %1477 = vrot.lane.b32.xlu1 %v1475_v6, %s2468_s13  ;;  %v1806_v6 = vld [vmem:[#allocation7 + $0x18] sm:$0xff] }
0x21bf   :  { %2236 = vmatprep.subr.mxu1 %v1806_v6 }
0x2230   :  { %v1478_v7 = vpop.permute.xlu1 %1477 }
0x2231   :  { %v1480_v61 = vadd.f32 %v1478_v7, %v1470_v60  ;;  %v1805_v60 = vld [vmem:[#allocation7 + $0x10] sm:$0xff]  ;;  %v1804_v7 = vld [vmem:[#allocation7 + $0x8] sm:$0xff] }
0x2233   :  { %2358 = vtanh.f32 %v1480_v61 }
0x2240   :  { %v2359_v62 = vpop.eup %2358 }
0x2241   :  { %1483 = vrot.lane.b32.xlu0 %v2359_v62, %s2468_s13 }
0x22b3   :  { %v1484_v63 = vpop.permute.xlu0 %1483 }
0x22b4   :  { %v1486_v1 = vmul.f32 %v2357_v58, %v1484_v63 }
0x22b6   :  { %1488 = vrot.lane.b32.xlu1 %v1486_v1, %s2469_s3 }
0x2328   :  { %v1489_v2 = vpop.permute.xlu1 %1488 }
0x2329   :  { %1491 = vst.msk [vmem:[#allocation3 + $0xc] sm:$0x1] %vm254_vm2, %v1489_v2  ;;  %2212 = vmatmul.mubr.msk.f32.vlgmr.msra.gmra.mxu0 %vm151_vm3, %v1489_v2 }
0x232a   :  { %2226 = vmatpush3.msra.mxu0 %v2392_v3  ;;  %2233 = vmatprep.mubr.msk.f32.mxu0 %vm2467_vm0, %v2466_v0  ;;  %v1961_v3 = vld [vmem:[%s2806_s5] ss:$0 sm:$0xff]  ;;  %s2436_s5 = scalar_lea.vmem %s1915_s17, 256 }
0x232b   :  { %2227 = vmatprep.subr.mxu0 %v2466_v0  ;;  %p2437_p10 = scmp.ne.s32.totalorder %s1915_s17, %s2436_s5  ;;  %p2442_p12 = scmp.lt.s32.totalorder %s2436_s5, %s2436_s5 }
0x232c   :  { %2228 = vmatpush3.msra.mxu0 %v2393_v8 }
0x232d   :  { %2229 = vmatprep.subr.mxu0 %v2466_v0  ;;  %p2443_p13 = por %p2442_p12, %p2441_p11 }
0x232e   :  { %2230 = vmatpush3.msra.mxu0 %v2394_v9 }
0x232f   :  { %2231 = vmatprep.subr.mxu0 %v2466_v0  ;;  %p2444_p0 = pnand %p2443_p13, %p2437_p10 }
0x2330   :  { %2232 = vmatpush3.msra.mxu0 %v2395_v10 }
0x23e9   :  { %v1561_v12 = vpop.f32.mrf.mxu0 }
0x23ea   :  { %v1565_v13 = vadd.f32 %v1561_v12, %v1492_v11 }
0x23eb   :  { %v2213_v14 = vpop.f32.mrf.mxu0 }
0x23ec   :  { %2360 = vtanh.f32 %v1565_v13  ;;  %v1956_v16 = vmul.f32 -1.442695, %v1565_v13 }
0x23ee   :  { %2362 = vpow2.f32 %v1956_v16 }
0x23f9   :  { %v2361_v15 = vpop.eup %2360 }
0x23fa   :  { %1575 = vrot.lane.b32.xlu0 %v2361_v15, %s2468_s13 }
0x23fb   :  { %v2363_v17 = vpop.eup %2362 }
0x23fc   :  { %v1569_v18 = vadd.f32 1.0, %v2363_v17 }
0x23fe   :  { %2364 = vrcp.f32 %v1569_v18 }
0x240b   :  { %v2365_v19 = vpop.eup %2364 }
0x240c   :  { %v1573_v0 = vmul.f32 %v2365_v19, %v1480_v61  ;;  %v1803_v61 = vld [vmem:[#allocation7] sm:$0xff] }
0x246c   :  { %v1576_v20 = vpop.permute.xlu0 %1575 }
0x246d   :  { %v1578_v21 = vmul.f32 %v2365_v19, %v1576_v20 }
0x246f   :  { %1580 = vrot.lane.b32.xlu1 %v1578_v21, %s2468_s13 }
0x24e1   :  { %v1581_v22 = vpop.permute.xlu1 %1580 }
0x24e2   :  { %v1583_v23 = vadd.f32 %v1581_v22, %v1573_v0 }
0x24e4   :  { %2366 = vtanh.f32 %v1583_v23 }
0x24f1   :  { %v2367_v24 = vpop.eup %2366 }
0x24f2   :  { %1586 = vrot.lane.b32.xlu0 %v2367_v24, %s2468_s13 }
0x2564   :  { %v1587_v25 = vpop.permute.xlu0 %1586 }
0x2565   :  { %v1589_v26 = vmul.f32 %v2365_v19, %v1587_v25 }
0x2567   :  { %1591 = vrot.lane.b32.xlu1 %v1589_v26, %s2469_s3 }
0x25d9   :  { %v1592_v27 = vpop.permute.xlu1 %1591 }
0x25da   :  { %1594 = vst.msk [vmem:[#allocation3 + $0xd] sm:$0x1] %vm254_vm2, %v1592_v27  ;;  %2223 = vmatmul.mubr.msk.f32.vlgmr.msra.gmra.mxu1 %vm151_vm3, %v1592_v27 }
0x25db   :  { %2244 = vmatprep.mubr.msk.f32.mxu1 %vm151_vm3, %v1801_v28  ;;  %2237 = vmatpush3.msra.mxu1 %v1806_v6 }
0x25dc   :  { %2238 = vmatprep.subr.mxu1 %v1805_v60 }
0x25dd   :  { %2239 = vmatpush3.msra.mxu1 %v1805_v60 }
0x25de   :  { %2240 = vmatprep.subr.mxu1 %v1804_v7 }
0x25df   :  { %2241 = vmatpush3.msra.mxu1 %v1804_v7 }
0x25e0   :  { %2242 = vmatprep.subr.mxu1 %v1803_v61 }
0x25e1   :  { %2243 = vmatpush3.msra.mxu1 %v1803_v61 }
0x269a   :  { %v1664_v30 = vpop.f32.mrf.mxu1 }
0x269b   :  { %v1668_v31 = vadd.f32 %v1664_v30, %v1595_v29 }
0x269c   :  { %v2224_v32 = vpop.f32.mrf.mxu1 }
0x269d   :  { %2368 = vtanh.f32 %v1668_v31  ;;  %v1958_v34 = vmul.f32 -1.442695, %v1668_v31 }
0x269f   :  { %2370 = vpow2.f32 %v1958_v34 }
0x26aa   :  { %v2369_v33 = vpop.eup %2368 }
0x26ab   :  { %1678 = vrot.lane.b32.xlu0 %v2369_v33, %s2468_s13 }
0x26ac   :  { %v2371_v35 = vpop.eup %2370 }
0x26ad   :  { %v1672_v36 = vadd.f32 1.0, %v2371_v35 }
0x26af   :  { %2372 = vrcp.f32 %v1672_v36 }
0x26bc   :  { %v2373_v37 = vpop.eup %2372 }
0x26bd   :  { %v1676_v40 = vmul.f32 %v2373_v37, %v1583_v23 }
0x271d   :  { %v1679_v38 = vpop.permute.xlu0 %1678 }
0x271e   :  { %v1681_v39 = vmul.f32 %v2373_v37, %v1679_v38 }
0x2720   :  { %1683 = vrot.lane.b32.xlu1 %v1681_v39, %s2468_s13 }
0x2792   :  { %v1684_v41 = vpop.permute.xlu1 %1683 }
0x2793   :  { %v1686_v42 = vadd.f32 %v1684_v41, %v1676_v40 }
0x2795   :  { %2374 = vtanh.f32 %v1686_v42 }
0x27a2   :  { %v2375_v43 = vpop.eup %2374 }
0x27a3   :  { %1689 = vrot.lane.b32.xlu0 %v2375_v43, %s2468_s13 }
0x2815   :  { %v1690_v44 = vpop.permute.xlu0 %1689 }
0x2816   :  { %v1692_v45 = vmul.f32 %v2373_v37, %v1690_v44 }
0x2818   :  { %1694 = vrot.lane.b32.xlu1 %v1692_v45, %s2469_s3 }
0x288a   :  { %v1695_v46 = vpop.permute.xlu1 %1694 }
0x288b   :  { %1697 = vst.msk [vmem:[#allocation3 + $0xe] sm:$0x1] %vm254_vm2, %v1695_v46  ;;  %2234 = vmatmul.mubr.msk.f32.vlgmr.msra.gmra.mxu0 %vm151_vm3, %v1695_v46 }
0x294b   :  { %v1767_v48 = vpop.f32.mrf.mxu0 }
0x294c   :  { %v1771_v49 = vadd.f32 %v1767_v48, %v1698_v47 }
0x294d   :  { %v2235_v50 = vpop.f32.mrf.mxu0 }
0x294e   :  { %2376 = vtanh.f32 %v1771_v49  ;;  %v1960_v52 = vmul.f32 -1.442695, %v1771_v49 }
0x2950   :  { %2378 = vpow2.f32 %v1960_v52 }
0x295b   :  { %v2377_v51 = vpop.eup %2376 }
0x295c   :  { %1781 = vrot.lane.b32.xlu0 %v2377_v51, %s2468_s13 }
0x295d   :  { %v2379_v53 = vpop.eup %2378 }
0x295e   :  { %v1775_v54 = vadd.f32 1.0, %v2379_v53 }
0x2960   :  { %2380 = vrcp.f32 %v1775_v54 }
0x296d   :  { %v2381_v55 = vpop.eup %2380 }
0x296e   :  { %v1779_v57 = vmul.f32 %v2381_v55, %v1686_v42 }
0x29ce   :  { %v1782_v4 = vpop.permute.xlu0 %1781 }
0x29cf   :  { %v1784_v56 = vmul.f32 %v2381_v55, %v1782_v4 }
0x29d1   :  { %1786 = vrot.lane.b32.xlu1 %v1784_v56, %s2468_s13 }
0x2a43   :  { %v1787_v5 = vpop.permute.xlu1 %1786 }
0x2a44   :  { %v1789_v58 = vadd.f32 %v1787_v5, %v1779_v57 }
0x2a46   :  { %2382 = vtanh.f32 %v1789_v58 }
0x2a53   :  { %v2383_v59 = vpop.eup %2382 }
0x2a54   :  { %1792 = vrot.lane.b32.xlu0 %v2383_v59, %s2468_s13 }
0x2ac6   :  { %v1793_v62 = vpop.permute.xlu0 %1792 }
0x2ac7   :  { %v1795_v63 = vmul.f32 %v2381_v55, %v1793_v62 }
0x2ac9   :  { %1797 = vrot.lane.b32.xlu1 %v1795_v63, %s2469_s3 }
0x2b3b   :  { %v1798_v1 = vpop.permute.xlu1 %1797 }
0x2b3c   :  { %1800 = vst.msk [vmem:[#allocation3 + $0xf] sm:$0x1] %vm254_vm2, %v1798_v1 }
0x2b43   :  { %v1802_v2 = vld [vmem:[#allocation3 + $0x8] sm:$0xff] }
0x2b44   :  { %2245 = vmatmul.mubr.msk.f32.vlgmr.msra.gmra.mxu1 %vm151_vm3, %v1802_v2 }
0x2c04   :  { %v2246_v8 = vpop.f32.mrf.mxu1 }
0x2c05   :  { %v1892_v9 = vadd.f32 %v2246_v8, %v1961_v3 }
0x2c06   :  { %v1886_v10 = vpop.f32.mrf.mxu1 }
0x2c07   :  { %v1965_v11 = vmul.f32 -1.442695, %v1892_v9  ;;  %v1887_v12 = vadd.f32 %v1961_v3, %v1886_v10 }
0x2c09   :  { %2384 = vpow2.f32 %v1965_v11  ;;  %v1964_v13 = vmul.f32 -1.442695, %v1887_v12 }
0x2c0b   :  { %2386 = vpow2.f32 %v1964_v13 }
0x2c16   :  { %v2385_v14 = vpop.eup %2384 }
0x2c17   :  { %v1902_v15 = vadd.f32 1.0, %v2385_v14 }
0x2c18   :  { %v2387_v16 = vpop.eup %2386 }
0x2c19   :  { %2388 = vrcp.f32 %v1902_v15  ;;  %v1901_v17 = vadd.f32 1.0, %v2387_v16 }
0x2c1b   :  { %2390 = vrcp.f32 %v1901_v17 }
0x2c26   :  { %v2389_v18 = vpop.eup %2388 }
0x2c27   :  { %1908 = vst [vmem:[#allocation9 + $0x8] sm:$0xff] %v2389_v18 }
0x2c28   :  { %v2391_v19 = vpop.eup %2390 }
0x2c29   :  { %1907 = vst [vmem:[#allocation9] sm:$0xff] %v2391_v19 }
0x2c2a   :  { %2447 = shalt.err (!%p2444_p0)
}
0x2c2b   :  { %1920 = dma.vmem_to_hbm [thread:$0]  %s1915_s17, 256, %s2807_s6, [#allocation6], %s2463_s24, %s2463_s24, %s2464_s25  }
0x2c2c   :  { %2460 = dma.done.wait [#allocation6], 256  }
0x2c2d   :  { %2461 = vsyncadd [#allocation6], 4294967040 }
0x2c2e   :  { %1924 = vsyncpa [#allocation5], 1 }
0x2c2f   :  { %1925 = vsyncpa [#allocation8], 1 }
0x2c30   :  { %1926 = vsyncpa [#allocation6], 1 }

</bundles_post_ra>
